<compile_context>
chip_gen: v5e
topology: v5e:2x2
jax: 0.10.0
libtpu: 0.0.40
codegen_flags: <defaults>
</compile_context>

<pallas_src>
import functools
import math

import jax
import jax.numpy as jnp
from jax.experimental import pallas as pl
from jax.experimental.pallas import tpu as pltpu


# ----------------------------------------------------------------------------
# Fused forward kernel (one batch element per grid step)
# ----------------------------------------------------------------------------

def _layer_norm(v, g, b, eps=1e-5):
    mu = jnp.mean(v, axis=-1, keepdims=True)
    var = jnp.mean((v - mu) * (v - mu), axis=-1, keepdims=True)
    return (v - mu) * jax.lax.rsqrt(var + eps) * g + b


def _mmdl_fused_kernel(
    x_ref, w_in_ref, b_in_ref,
    wqkv_ref, bqkv_ref, wo_ref, bo_ref,
    ln1g_ref, ln1b_ref, w1_ref, b1_ref, w2_ref, b2_ref,
    ln2g_ref, ln2b_ref,
    w_fc_ref, b_fc_ref,
    feat_ref, out_ref,
    *, num_layers, num_heads,
):
    x = x_ref[0].astype(jnp.float32)                     # (S, Din)
    S = x.shape[0]
    D = w_in_ref.shape[1]
    dh = D // num_heads
    scale = 1.0 / math.sqrt(dh)

    # Input projection: (S, Din) @ (Din, D) + b
    h = jnp.dot(x, w_in_ref[...], preferred_element_type=jnp.float32) + b_in_ref[...]

    for l in range(num_layers):                          # statically unrolled
        # ---- self-attention (fused QKV matmul, heads split by lane slicing) ----
        qkv = jnp.dot(h, wqkv_ref[l], preferred_element_type=jnp.float32) + bqkv_ref[l]
        wo = wo_ref[l]                                   # (D, D)
        attn = jnp.zeros((S, D), jnp.float32)
        for hh in range(num_heads):
            lo = hh * dh
            q_h = qkv[:, lo:lo + dh]                     # (S, dh)
            k_h = qkv[:, D + lo:D + lo + dh]
            v_h = qkv[:, 2 * D + lo:2 * D + lo + dh]
            s = jnp.einsum("qd,kd->qk", q_h, k_h,
                           preferred_element_type=jnp.float32) * scale
            s = s - jnp.max(s, axis=-1, keepdims=True)
            p = jnp.exp(s)
            p = p * pl.reciprocal(jnp.sum(p, axis=-1, keepdims=True))
            ctx_h = jnp.dot(p, v_h, preferred_element_type=jnp.float32)   # (S, dh)
            # concat-over-heads folded into the output projection
            attn = attn + jnp.dot(ctx_h, wo[lo:lo + dh, :],
                                  preferred_element_type=jnp.float32)
        attn = attn + bo_ref[l]

        # residual + LayerNorm 1 (post-norm, eps=1e-5 as in nn.LayerNorm)
        h = _layer_norm(h + attn, ln1g_ref[l], ln1b_ref[l])

        # ---- feed-forward ----
        ff = jnp.maximum(
            jnp.dot(h, w1_ref[l], preferred_element_type=jnp.float32) + b1_ref[l], 0.0)
        ff = jnp.dot(ff, w2_ref[l], preferred_element_type=jnp.float32) + b2_ref[l]
        h = _layer_norm(h + ff, ln2g_ref[l], ln2b_ref[l])

    # mean over sequence (dim 0 of the seq-first layout in the PyTorch model)
    feat = jnp.mean(h, axis=0, keepdims=True)            # (1, D)
    logits = jnp.dot(feat, w_fc_ref[...],
                     preferred_element_type=jnp.float32) + b_fc_ref[...]

    feat_ref[0] = feat.astype(feat_ref.dtype)
    out_ref[0] = logits.astype(out_ref.dtype)


# ----------------------------------------------------------------------------
# Host wrapper: pack per-layer params into stacked arrays + single pallas_call
# ----------------------------------------------------------------------------

def _pack_params(params):
    layers = params["layers"]

    def stk(fn):
        return jnp.stack([fn(p) for p in layers])

    return dict(
        w_in=params["w_in"],
        b_in=params["b_in"].reshape(1, -1),
        wqkv=stk(lambda p: jnp.concatenate([p["wq"], p["wk"], p["wv"]], axis=1)),
        bqkv=stk(lambda p: jnp.concatenate([p["bq"], p["bk"], p["bv"]]).reshape(1, -1)),
        wo=stk(lambda p: p["wo"]),
        bo=stk(lambda p: p["bo"].reshape(1, -1)),
        ln1g=stk(lambda p: p["ln1_g"].reshape(1, -1)),
        ln1b=stk(lambda p: p["ln1_b"].reshape(1, -1)),
        w1=stk(lambda p: p["w1"]),
        b1=stk(lambda p: p["b1"].reshape(1, -1)),
        w2=stk(lambda p: p["w2"]),
        b2=stk(lambda p: p["b2"].reshape(1, -1)),
        ln2g=stk(lambda p: p["ln2_g"].reshape(1, -1)),
        ln2b=stk(lambda p: p["ln2_b"].reshape(1, -1)),
        w_fc=params["w_fc"],
        b_fc=params["b_fc"].reshape(1, -1),
    )


def mmdl_forward(x, params, num_heads):
    """x: (B, S, input_dim) -> (logits (B, output_dim), feat (B, D))."""
    B, S, Din = x.shape
    D = params["w_in"].shape[1]
    Hf = params["layers"][0]["w1"].shape[1]
    N = params["w_fc"].shape[1]
    L = len(params["layers"])
    pk = _pack_params(params)

    def full_spec(shape):
        if len(shape) == 2:
            return pl.BlockSpec(shape, lambda b: (0, 0))
        return pl.BlockSpec(shape, lambda b: (0, 0, 0))

    in_specs = [
        pl.BlockSpec((1, S, Din), lambda b: (b, 0, 0)),        # x (per-batch block)
        full_spec((Din, D)), full_spec((1, D)),                # w_in, b_in
        full_spec((L, D, 3 * D)), full_spec((L, 1, 3 * D)),    # wqkv, bqkv
        full_spec((L, D, D)), full_spec((L, 1, D)),            # wo, bo
        full_spec((L, 1, D)), full_spec((L, 1, D)),            # ln1 gamma/beta
        full_spec((L, D, Hf)), full_spec((L, 1, Hf)),          # w1, b1
        full_spec((L, Hf, D)), full_spec((L, 1, D)),           # w2, b2
        full_spec((L, 1, D)), full_spec((L, 1, D)),            # ln2 gamma/beta
        full_spec((D, N)), full_spec((1, N)),                  # w_fc, b_fc
    ]
    out_specs = (
        pl.BlockSpec((1, 1, D), lambda b: (b, 0, 0)),          # feat
        pl.BlockSpec((1, 1, N), lambda b: (b, 0, 0)),          # logits
    )

    feat, logits = pl.pallas_call(
        functools.partial(_mmdl_fused_kernel, num_layers=L, num_heads=num_heads),
        out_shape=(
            jax.ShapeDtypeStruct((B, 1, D), jnp.float32),
            jax.ShapeDtypeStruct((B, 1, N), jnp.float32),
        ),
        grid=(B,),
        in_specs=in_specs,
        out_specs=out_specs,
        compiler_params=pltpu.CompilerParams(dimension_semantics=("parallel",)),
    )(
        x, pk["w_in"], pk["b_in"],
        pk["wqkv"], pk["bqkv"], pk["wo"], pk["bo"],
        pk["ln1g"], pk["ln1b"], pk["w1"], pk["b1"], pk["w2"], pk["b2"],
        pk["ln2g"], pk["ln2b"], pk["w_fc"], pk["b_fc"],
    )
    return logits.reshape(B, N), feat.reshape(B, D)


# ----------------------------------------------------------------------------
# Pure-JAX reference (for correctness check)
# ----------------------------------------------------------------------------

def ref_forward(x, params, num_heads):
    def ln(t, g, b):
        m = jnp.mean(t, axis=-1, keepdims=True)
        v = jnp.mean((t - m) ** 2, axis=-1, keepdims=True)
        return (t - m) * jax.lax.rsqrt(v + 1e-5) * g + b

    B, S, _ = x.shape
    h = x @ params["w_in"] + params["b_in"]
    D = h.shape[-1]
    dh = D // num_heads
    for p in params["layers"]:
        q = (h @ p["wq"] + p["bq"]).reshape(B, S, num_heads, dh).transpose(0, 2, 1, 3)
        k = (h @ p["wk"] + p["bk"]).reshape(B, S, num_heads, dh).transpose(0, 2, 1, 3)
        v = (h @ p["wv"] + p["bv"]).reshape(B, S, num_heads, dh).transpose(0, 2, 1, 3)
        s = jnp.einsum("bhqd,bhkd->bhqk", q, k) / math.sqrt(dh)
        a = jax.nn.softmax(s, axis=-1)
        ctx = jnp.einsum("bhqk,bhkd->bhqd", a, v).transpose(0, 2, 1, 3).reshape(B, S, D)
        h = ln(h + (ctx @ p["wo"] + p["bo"]), p["ln1_g"], p["ln1_b"])
        ff = jnp.maximum(h @ p["w1"] + p["b1"], 0.0) @ p["w2"] + p["b2"]
        h = ln(h + ff, p["ln2_g"], p["ln2_b"])
    feat = jnp.mean(h, axis=1)
    return feat @ params["w_fc"] + params["b_fc"], feat


# ----------------------------------------------------------------------------
# Deterministic parameter init + driver
# ----------------------------------------------------------------------------

def init_params(key, input_dim, d_model, hidden_dim, output_dim, num_layers):
    def dense(k, fan_in, fan_out):
        return jax.random.normal(k, (fan_in, fan_out), jnp.float32) * 0.05

    keys = jax.random.split(key, 2 + num_layers)
    params = {
        "w_in": dense(keys[0], input_dim, d_model),
        "b_in": jnp.zeros((d_model,), jnp.float32),
        "w_fc": dense(keys[1], d_model, output_dim),
        "b_fc": jnp.zeros((output_dim,), jnp.float32),
        "layers": [],
    }
    for l in range(num_layers):
        ks = jax.random.split(keys[2 + l], 6)
        params["layers"].append({
            "wq": dense(ks[0], d_model, d_model), "bq": jnp.zeros((d_model,), jnp.float32),
            "wk": dense(ks[1], d_model, d_model), "bk": jnp.zeros((d_model,), jnp.float32),
            "wv": dense(ks[2], d_model, d_model), "bv": jnp.zeros((d_model,), jnp.float32),
            "wo": dense(ks[3], d_model, d_model), "bo": jnp.zeros((d_model,), jnp.float32),
            "ln1_g": jnp.ones((d_model,), jnp.float32), "ln1_b": jnp.zeros((d_model,), jnp.float32),
            "w1": dense(ks[4], d_model, hidden_dim), "b1": jnp.zeros((hidden_dim,), jnp.float32),
            "w2": dense(ks[5], hidden_dim, d_model), "b2": jnp.zeros((d_model,), jnp.float32),
            "ln2_g": jnp.ones((d_model,), jnp.float32), "ln2_b": jnp.zeros((d_model,), jnp.float32),
        })
    return params


if __name__ == "__main__":
    B, S, INPUT_DIM = 2, 8, 16
    D_MODEL, NUM_HEADS, NUM_LAYERS, HIDDEN_DIM, OUTPUT_DIM = 32, 4, 2, 64, 2

    root = jax.random.PRNGKey(0)
    kx, kp = jax.random.split(root)
    x = jax.random.normal(kx, (B, S, INPUT_DIM), jnp.float32)
    params = init_params(kp, INPUT_DIM, D_MODEL, HIDDEN_DIM, OUTPUT_DIM, NUM_LAYERS)

    logits, feat = mmdl_forward(x, params, NUM_HEADS)
    jax.block_until_ready((logits, feat))

    ref_logits, ref_feat = ref_forward(x, params, NUM_HEADS)
    assert logits.shape == (B, OUTPUT_DIM) and feat.shape == (B, D_MODEL)
    assert jnp.allclose(logits, ref_logits, atol=1e-4, rtol=1e-4)
    assert jnp.allclose(feat, ref_feat, atol=1e-4, rtol=1e-4)

    print("KERNEL_OK")
</pallas_src>

<mosaic_0001>
module attributes {stable_mosaic.version = 11 : i64} {
  func.func @_mmdl_fused_kernel(%arg0: i32, %arg1: memref<1x8x16xf32, #tpu.memory_space<vmem>>, %arg2: memref<16x32xf32, #tpu.memory_space<vmem>>, %arg3: memref<1x32xf32, #tpu.memory_space<vmem>>, %arg4: memref<2x32x96xf32, #tpu.memory_space<vmem>>, %arg5: memref<2x1x96xf32, #tpu.memory_space<vmem>>, %arg6: memref<2x32x32xf32, #tpu.memory_space<vmem>>, %arg7: memref<2x1x32xf32, #tpu.memory_space<vmem>>, %arg8: memref<2x1x32xf32, #tpu.memory_space<vmem>>, %arg9: memref<2x1x32xf32, #tpu.memory_space<vmem>>, %arg10: memref<2x32x64xf32, #tpu.memory_space<vmem>>, %arg11: memref<2x1x64xf32, #tpu.memory_space<vmem>>, %arg12: memref<2x64x32xf32, #tpu.memory_space<vmem>>, %arg13: memref<2x1x32xf32, #tpu.memory_space<vmem>>, %arg14: memref<2x1x32xf32, #tpu.memory_space<vmem>>, %arg15: memref<2x1x32xf32, #tpu.memory_space<vmem>>, %arg16: memref<32x2xf32, #tpu.memory_space<vmem>>, %arg17: memref<1x2xf32, #tpu.memory_space<vmem>>, %arg18: memref<1x1x32xf32, #tpu.memory_space<vmem>>, %arg19: memref<1x1x2xf32, #tpu.memory_space<vmem>>) attributes {dimension_semantics = [#tpu.dimension_semantics<parallel>], iteration_bounds = array<i64: 2>, scalar_prefetch = 0 : i64, scratch_operands = 0 : i64, tpu.core_type = #tpu.core_type<tc>, window_params = [{transform_indices = @transform_0, window_bounds = array<i64: 1, 8, 16>}, {pipeline_mode = #tpu.pipeline_mode<synchronous>, transform_indices = @transform_1, window_bounds = array<i64: 16, 32>}, {pipeline_mode = #tpu.pipeline_mode<synchronous>, transform_indices = @transform_2, window_bounds = array<i64: 1, 32>}, {pipeline_mode = #tpu.pipeline_mode<synchronous>, transform_indices = @transform_3, window_bounds = array<i64: 2, 32, 96>}, {pipeline_mode = #tpu.pipeline_mode<synchronous>, transform_indices = @transform_4, window_bounds = array<i64: 2, 1, 96>}, {pipeline_mode = #tpu.pipeline_mode<synchronous>, transform_indices = @transform_5, window_bounds = array<i64: 2, 32, 32>}, {pipeline_mode = #tpu.pipeline_mode<synchronous>, transform_indices = @transform_6, window_bounds = array<i64: 2, 1, 32>}, {pipeline_mode = #tpu.pipeline_mode<synchronous>, transform_indices = @transform_7, window_bounds = array<i64: 2, 1, 32>}, {pipeline_mode = #tpu.pipeline_mode<synchronous>, transform_indices = @transform_8, window_bounds = array<i64: 2, 1, 32>}, {pipeline_mode = #tpu.pipeline_mode<synchronous>, transform_indices = @transform_9, window_bounds = array<i64: 2, 32, 64>}, {pipeline_mode = #tpu.pipeline_mode<synchronous>, transform_indices = @transform_10, window_bounds = array<i64: 2, 1, 64>}, {pipeline_mode = #tpu.pipeline_mode<synchronous>, transform_indices = @transform_11, window_bounds = array<i64: 2, 64, 32>}, {pipeline_mode = #tpu.pipeline_mode<synchronous>, transform_indices = @transform_12, window_bounds = array<i64: 2, 1, 32>}, {pipeline_mode = #tpu.pipeline_mode<synchronous>, transform_indices = @transform_13, window_bounds = array<i64: 2, 1, 32>}, {pipeline_mode = #tpu.pipeline_mode<synchronous>, transform_indices = @transform_14, window_bounds = array<i64: 2, 1, 32>}, {pipeline_mode = #tpu.pipeline_mode<synchronous>, transform_indices = @transform_15, window_bounds = array<i64: 32, 2>}, {pipeline_mode = #tpu.pipeline_mode<synchronous>, transform_indices = @transform_16, window_bounds = array<i64: 1, 2>}, {transform_indices = @transform_17, window_bounds = array<i64: 1, 1, 32>}, {transform_indices = @transform_18, window_bounds = array<i64: 1, 1, 2>}]} {
    %c0 = arith.constant 0 : index
    %c0_0 = arith.constant 0 : index
    %c0_1 = arith.constant 0 : index
    %0 = vector.load %arg1[%c0, %c0_0, %c0_1] : memref<1x8x16xf32, #tpu.memory_space<vmem>>, vector<1x8x16xf32>
    %1 = vector.shape_cast %0 : vector<1x8x16xf32> to vector<8x16xf32>
    %c0_2 = arith.constant 0 : index
    %c0_3 = arith.constant 0 : index
    %2 = vector.load %arg2[%c0_2, %c0_3] : memref<16x32xf32, #tpu.memory_space<vmem>>, vector<16x32xf32>
    %cst = arith.constant dense<0.000000e+00> : vector<8x32xf32>
    %3 = tpu.matmul %1, %2, %cst {dimension_numbers = #tpu.dot_dimension_numbers<[1], [0], [0], [1], [0, 0, 1, 1], [], []>} : vector<8x16xf32>, vector<16x32xf32>, vector<8x32xf32> -> vector<8x32xf32>
    %c0_4 = arith.constant 0 : index
    %c0_5 = arith.constant 0 : index
    %4 = vector.load %arg3[%c0_4, %c0_5] : memref<1x32xf32, #tpu.memory_space<vmem>>, vector<1x32xf32>
    %5 = vector.broadcast %4 : vector<1x32xf32> to vector<8x32xf32>
    %6 = arith.addf %3, %5 : vector<8x32xf32>
    %c0_6 = arith.constant 0 : index
    %c0_7 = arith.constant 0 : index
    %c0_8 = arith.constant 0 : index
    %7 = vector.load %arg4[%c0_6, %c0_7, %c0_8] : memref<2x32x96xf32, #tpu.memory_space<vmem>>, vector<1x32x96xf32>
    %8 = vector.shape_cast %7 : vector<1x32x96xf32> to vector<32x96xf32>
    %cst_9 = arith.constant dense<0.000000e+00> : vector<8x96xf32>
    %9 = tpu.matmul %6, %8, %cst_9 {dimension_numbers = #tpu.dot_dimension_numbers<[1], [0], [0], [1], [0, 0, 1, 1], [], []>} : vector<8x32xf32>, vector<32x96xf32>, vector<8x96xf32> -> vector<8x96xf32>
    %c0_10 = arith.constant 0 : index
    %c0_11 = arith.constant 0 : index
    %c0_12 = arith.constant 0 : index
    %10 = vector.load %arg5[%c0_10, %c0_11, %c0_12] : memref<2x1x96xf32, #tpu.memory_space<vmem>>, vector<1x1x96xf32>
    %11 = vector.shape_cast %10 : vector<1x1x96xf32> to vector<1x96xf32>
    %12 = vector.broadcast %11 : vector<1x96xf32> to vector<8x96xf32>
    %13 = arith.addf %9, %12 : vector<8x96xf32>
    %c0_13 = arith.constant 0 : index
    %c0_14 = arith.constant 0 : index
    %c0_15 = arith.constant 0 : index
    %14 = vector.load %arg6[%c0_13, %c0_14, %c0_15] : memref<2x32x32xf32, #tpu.memory_space<vmem>>, vector<1x32x32xf32>
    %15 = vector.shape_cast %14 : vector<1x32x32xf32> to vector<32x32xf32>
    %cst_16 = arith.constant 0.000000e+00 : f32
    %16 = vector.broadcast %cst_16 : f32 to vector<8x32xf32>
    %17 = vector.extract_strided_slice %13 {offsets = [0, 0], sizes = [8, 8], strides = [1, 1]} : vector<8x96xf32> to vector<8x8xf32>
    %18 = vector.extract_strided_slice %13 {offsets = [0, 32], sizes = [8, 8], strides = [1, 1]} : vector<8x96xf32> to vector<8x8xf32>
    %19 = vector.extract_strided_slice %13 {offsets = [0, 64], sizes = [8, 8], strides = [1, 1]} : vector<8x96xf32> to vector<8x8xf32>
    "tpu.trace_start"() <{level = 10 : i32, message = "qd,kd->qk"}> : () -> ()
    %cst_17 = arith.constant dense<0.000000e+00> : vector<8x8xf32>
    %20 = tpu.matmul %17, %18, %cst_17 {dimension_numbers = #tpu.dot_dimension_numbers<[1], [1], [0], [0], [0, 0, 1, 0], [], []>} : vector<8x8xf32>, vector<8x8xf32>, vector<8x8xf32> -> vector<8x8xf32>
    "tpu.trace_stop"() : () -> ()
    %cst_18 = arith.constant 0.353553385 : f32
    %21 = vector.broadcast %cst_18 : f32 to vector<8x8xf32>
    %22 = arith.mulf %20, %21 : vector<8x8xf32>
    %cst_19 = arith.constant dense<0xFF800000> : vector<8xf32>
    %23 = vector.multi_reduction <maximumf>, %22, %cst_19 [1] : vector<8x8xf32> to vector<8xf32>
    %24 = vector.shape_cast %23 : vector<8xf32> to vector<8x1xf32>
    %25 = vector.broadcast %24 : vector<8x1xf32> to vector<8x8xf32>
    %26 = arith.subf %22, %25 : vector<8x8xf32>
    %27 = math.exp %26 : vector<8x8xf32>
    %cst_20 = arith.constant dense<0.000000e+00> : vector<8xf32>
    %28 = vector.multi_reduction <add>, %27, %cst_20 [1] : vector<8x8xf32> to vector<8xf32>
    %29 = vector.shape_cast %28 : vector<8xf32> to vector<8x1xf32>
    %30 = tpu.reciprocal %29 : vector<8x1xf32> -> vector<8x1xf32>
    %31 = vector.broadcast %30 : vector<8x1xf32> to vector<8x8xf32>
    %32 = arith.mulf %27, %31 : vector<8x8xf32>
    %cst_21 = arith.constant dense<0.000000e+00> : vector<8x8xf32>
    %33 = tpu.matmul %32, %19, %cst_21 {dimension_numbers = #tpu.dot_dimension_numbers<[1], [0], [0], [1], [0, 0, 1, 1], [], []>} : vector<8x8xf32>, vector<8x8xf32>, vector<8x8xf32> -> vector<8x8xf32>
    %34 = vector.extract_strided_slice %15 {offsets = [0, 0], sizes = [8, 32], strides = [1, 1]} : vector<32x32xf32> to vector<8x32xf32>
    %cst_22 = arith.constant dense<0.000000e+00> : vector<8x32xf32>
    %35 = tpu.matmul %33, %34, %cst_22 {dimension_numbers = #tpu.dot_dimension_numbers<[1], [0], [0], [1], [0, 0, 1, 1], [], []>} : vector<8x8xf32>, vector<8x32xf32>, vector<8x32xf32> -> vector<8x32xf32>
    %36 = arith.addf %16, %35 : vector<8x32xf32>
    %37 = vector.extract_strided_slice %13 {offsets = [0, 8], sizes = [8, 8], strides = [1, 1]} : vector<8x96xf32> to vector<8x8xf32>
    %38 = vector.extract_strided_slice %13 {offsets = [0, 40], sizes = [8, 8], strides = [1, 1]} : vector<8x96xf32> to vector<8x8xf32>
    %39 = vector.extract_strided_slice %13 {offsets = [0, 72], sizes = [8, 8], strides = [1, 1]} : vector<8x96xf32> to vector<8x8xf32>
    "tpu.trace_start"() <{level = 10 : i32, message = "qd,kd->qk"}> : () -> ()
    %cst_23 = arith.constant dense<0.000000e+00> : vector<8x8xf32>
    %40 = tpu.matmul %37, %38, %cst_23 {dimension_numbers = #tpu.dot_dimension_numbers<[1], [1], [0], [0], [0, 0, 1, 0], [], []>} : vector<8x8xf32>, vector<8x8xf32>, vector<8x8xf32> -> vector<8x8xf32>
    "tpu.trace_stop"() : () -> ()
    %cst_24 = arith.constant 0.353553385 : f32
    %41 = vector.broadcast %cst_24 : f32 to vector<8x8xf32>
    %42 = arith.mulf %40, %41 : vector<8x8xf32>
    %cst_25 = arith.constant dense<0xFF800000> : vector<8xf32>
    %43 = vector.multi_reduction <maximumf>, %42, %cst_25 [1] : vector<8x8xf32> to vector<8xf32>
    %44 = vector.shape_cast %43 : vector<8xf32> to vector<8x1xf32>
    %45 = vector.broadcast %44 : vector<8x1xf32> to vector<8x8xf32>
    %46 = arith.subf %42, %45 : vector<8x8xf32>
    %47 = math.exp %46 : vector<8x8xf32>
    %cst_26 = arith.constant dense<0.000000e+00> : vector<8xf32>
    %48 = vector.multi_reduction <add>, %47, %cst_26 [1] : vector<8x8xf32> to vector<8xf32>
    %49 = vector.shape_cast %48 : vector<8xf32> to vector<8x1xf32>
    %50 = tpu.reciprocal %49 : vector<8x1xf32> -> vector<8x1xf32>
    %51 = vector.broadcast %50 : vector<8x1xf32> to vector<8x8xf32>
    %52 = arith.mulf %47, %51 : vector<8x8xf32>
    %cst_27 = arith.constant dense<0.000000e+00> : vector<8x8xf32>
    %53 = tpu.matmul %52, %39, %cst_27 {dimension_numbers = #tpu.dot_dimension_numbers<[1], [0], [0], [1], [0, 0, 1, 1], [], []>} : vector<8x8xf32>, vector<8x8xf32>, vector<8x8xf32> -> vector<8x8xf32>
    %54 = vector.extract_strided_slice %15 {offsets = [8, 0], sizes = [8, 32], strides = [1, 1]} : vector<32x32xf32> to vector<8x32xf32>
    %cst_28 = arith.constant dense<0.000000e+00> : vector<8x32xf32>
    %55 = tpu.matmul %53, %54, %cst_28 {dimension_numbers = #tpu.dot_dimension_numbers<[1], [0], [0], [1], [0, 0, 1, 1], [], []>} : vector<8x8xf32>, vector<8x32xf32>, vector<8x32xf32> -> vector<8x32xf32>
    %56 = arith.addf %36, %55 : vector<8x32xf32>
    %57 = vector.extract_strided_slice %13 {offsets = [0, 16], sizes = [8, 8], strides = [1, 1]} : vector<8x96xf32> to vector<8x8xf32>
    %58 = vector.extract_strided_slice %13 {offsets = [0, 48], sizes = [8, 8], strides = [1, 1]} : vector<8x96xf32> to vector<8x8xf32>
    %59 = vector.extract_strided_slice %13 {offsets = [0, 80], sizes = [8, 8], strides = [1, 1]} : vector<8x96xf32> to vector<8x8xf32>
    "tpu.trace_start"() <{level = 10 : i32, message = "qd,kd->qk"}> : () -> ()
    %cst_29 = arith.constant dense<0.000000e+00> : vector<8x8xf32>
    %60 = tpu.matmul %57, %58, %cst_29 {dimension_numbers = #tpu.dot_dimension_numbers<[1], [1], [0], [0], [0, 0, 1, 0], [], []>} : vector<8x8xf32>, vector<8x8xf32>, vector<8x8xf32> -> vector<8x8xf32>
    "tpu.trace_stop"() : () -> ()
    %cst_30 = arith.constant 0.353553385 : f32
    %61 = vector.broadcast %cst_30 : f32 to vector<8x8xf32>
    %62 = arith.mulf %60, %61 : vector<8x8xf32>
    %cst_31 = arith.constant dense<0xFF800000> : vector<8xf32>
    %63 = vector.multi_reduction <maximumf>, %62, %cst_31 [1] : vector<8x8xf32> to vector<8xf32>
    %64 = vector.shape_cast %63 : vector<8xf32> to vector<8x1xf32>
    %65 = vector.broadcast %64 : vector<8x1xf32> to vector<8x8xf32>
    %66 = arith.subf %62, %65 : vector<8x8xf32>
    %67 = math.exp %66 : vector<8x8xf32>
    %cst_32 = arith.constant dense<0.000000e+00> : vector<8xf32>
    %68 = vector.multi_reduction <add>, %67, %cst_32 [1] : vector<8x8xf32> to vector<8xf32>
    %69 = vector.shape_cast %68 : vector<8xf32> to vector<8x1xf32>
    %70 = tpu.reciprocal %69 : vector<8x1xf32> -> vector<8x1xf32>
    %71 = vector.broadcast %70 : vector<8x1xf32> to vector<8x8xf32>
    %72 = arith.mulf %67, %71 : vector<8x8xf32>
    %cst_33 = arith.constant dense<0.000000e+00> : vector<8x8xf32>
    %73 = tpu.matmul %72, %59, %cst_33 {dimension_numbers = #tpu.dot_dimension_numbers<[1], [0], [0], [1], [0, 0, 1, 1], [], []>} : vector<8x8xf32>, vector<8x8xf32>, vector<8x8xf32> -> vector<8x8xf32>
    %74 = vector.extract_strided_slice %15 {offsets = [16, 0], sizes = [8, 32], strides = [1, 1]} : vector<32x32xf32> to vector<8x32xf32>
    %cst_34 = arith.constant dense<0.000000e+00> : vector<8x32xf32>
    %75 = tpu.matmul %73, %74, %cst_34 {dimension_numbers = #tpu.dot_dimension_numbers<[1], [0], [0], [1], [0, 0, 1, 1], [], []>} : vector<8x8xf32>, vector<8x32xf32>, vector<8x32xf32> -> vector<8x32xf32>
    %76 = arith.addf %56, %75 : vector<8x32xf32>
    %77 = vector.extract_strided_slice %13 {offsets = [0, 24], sizes = [8, 8], strides = [1, 1]} : vector<8x96xf32> to vector<8x8xf32>
    %78 = vector.extract_strided_slice %13 {offsets = [0, 56], sizes = [8, 8], strides = [1, 1]} : vector<8x96xf32> to vector<8x8xf32>
    %79 = vector.extract_strided_slice %13 {offsets = [0, 88], sizes = [8, 8], strides = [1, 1]} : vector<8x96xf32> to vector<8x8xf32>
    "tpu.trace_start"() <{level = 10 : i32, message = "qd,kd->qk"}> : () -> ()
    %cst_35 = arith.constant dense<0.000000e+00> : vector<8x8xf32>
    %80 = tpu.matmul %77, %78, %cst_35 {dimension_numbers = #tpu.dot_dimension_numbers<[1], [1], [0], [0], [0, 0, 1, 0], [], []>} : vector<8x8xf32>, vector<8x8xf32>, vector<8x8xf32> -> vector<8x8xf32>
    "tpu.trace_stop"() : () -> ()
    %cst_36 = arith.constant 0.353553385 : f32
    %81 = vector.broadcast %cst_36 : f32 to vector<8x8xf32>
    %82 = arith.mulf %80, %81 : vector<8x8xf32>
    %cst_37 = arith.constant dense<0xFF800000> : vector<8xf32>
    %83 = vector.multi_reduction <maximumf>, %82, %cst_37 [1] : vector<8x8xf32> to vector<8xf32>
    %84 = vector.shape_cast %83 : vector<8xf32> to vector<8x1xf32>
    %85 = vector.broadcast %84 : vector<8x1xf32> to vector<8x8xf32>
    %86 = arith.subf %82, %85 : vector<8x8xf32>
    %87 = math.exp %86 : vector<8x8xf32>
    %cst_38 = arith.constant dense<0.000000e+00> : vector<8xf32>
    %88 = vector.multi_reduction <add>, %87, %cst_38 [1] : vector<8x8xf32> to vector<8xf32>
    %89 = vector.shape_cast %88 : vector<8xf32> to vector<8x1xf32>
    %90 = tpu.reciprocal %89 : vector<8x1xf32> -> vector<8x1xf32>
    %91 = vector.broadcast %90 : vector<8x1xf32> to vector<8x8xf32>
    %92 = arith.mulf %87, %91 : vector<8x8xf32>
    %cst_39 = arith.constant dense<0.000000e+00> : vector<8x8xf32>
    %93 = tpu.matmul %92, %79, %cst_39 {dimension_numbers = #tpu.dot_dimension_numbers<[1], [0], [0], [1], [0, 0, 1, 1], [], []>} : vector<8x8xf32>, vector<8x8xf32>, vector<8x8xf32> -> vector<8x8xf32>
    %94 = vector.extract_strided_slice %15 {offsets = [24, 0], sizes = [8, 32], strides = [1, 1]} : vector<32x32xf32> to vector<8x32xf32>
    %cst_40 = arith.constant dense<0.000000e+00> : vector<8x32xf32>
    %95 = tpu.matmul %93, %94, %cst_40 {dimension_numbers = #tpu.dot_dimension_numbers<[1], [0], [0], [1], [0, 0, 1, 1], [], []>} : vector<8x8xf32>, vector<8x32xf32>, vector<8x32xf32> -> vector<8x32xf32>
    %96 = arith.addf %76, %95 : vector<8x32xf32>
    %c0_41 = arith.constant 0 : index
    %c0_42 = arith.constant 0 : index
    %c0_43 = arith.constant 0 : index
    %97 = vector.load %arg7[%c0_41, %c0_42, %c0_43] : memref<2x1x32xf32, #tpu.memory_space<vmem>>, vector<1x1x32xf32>
    %98 = vector.shape_cast %97 : vector<1x1x32xf32> to vector<1x32xf32>
    %99 = vector.broadcast %98 : vector<1x32xf32> to vector<8x32xf32>
    %100 = arith.addf %96, %99 : vector<8x32xf32>
    %101 = arith.addf %6, %100 : vector<8x32xf32>
    %c0_44 = arith.constant 0 : index
    %c0_45 = arith.constant 0 : index
    %c0_46 = arith.constant 0 : index
    %102 = vector.load %arg8[%c0_44, %c0_45, %c0_46] : memref<2x1x32xf32, #tpu.memory_space<vmem>>, vector<1x1x32xf32>
    %103 = vector.shape_cast %102 : vector<1x1x32xf32> to vector<1x32xf32>
    %c0_47 = arith.constant 0 : index
    %c0_48 = arith.constant 0 : index
    %c0_49 = arith.constant 0 : index
    %104 = vector.load %arg9[%c0_47, %c0_48, %c0_49] : memref<2x1x32xf32, #tpu.memory_space<vmem>>, vector<1x1x32xf32>
    %105 = vector.shape_cast %104 : vector<1x1x32xf32> to vector<1x32xf32>
    %cst_50 = arith.constant dense<0.000000e+00> : vector<8xf32>
    %106 = vector.multi_reduction <add>, %101, %cst_50 [1] : vector<8x32xf32> to vector<8xf32>
    %107 = vector.shape_cast %106 : vector<8xf32> to vector<8x1xf32>
    %cst_51 = arith.constant 3.200000e+01 : f32
    %108 = vector.broadcast %cst_51 : f32 to vector<8x1xf32>
    %109 = arith.divf %107, %108 : vector<8x1xf32>
    %110 = vector.broadcast %109 : vector<8x1xf32> to vector<8x32xf32>
    %111 = arith.subf %101, %110 : vector<8x32xf32>
    %112 = vector.broadcast %109 : vector<8x1xf32> to vector<8x32xf32>
    %113 = arith.subf %101, %112 : vector<8x32xf32>
    %114 = arith.mulf %111, %113 : vector<8x32xf32>
    %cst_52 = arith.constant dense<0.000000e+00> : vector<8xf32>
    %115 = vector.multi_reduction <add>, %114, %cst_52 [1] : vector<8x32xf32> to vector<8xf32>
    %116 = vector.shape_cast %115 : vector<8xf32> to vector<8x1xf32>
    %cst_53 = arith.constant 3.200000e+01 : f32
    %117 = vector.broadcast %cst_53 : f32 to vector<8x1xf32>
    %118 = arith.divf %116, %117 : vector<8x1xf32>
    %119 = vector.broadcast %109 : vector<8x1xf32> to vector<8x32xf32>
    %120 = arith.subf %101, %119 : vector<8x32xf32>
    %cst_54 = arith.constant 9.99999974E-6 : f32
    %121 = vector.broadcast %cst_54 : f32 to vector<8x1xf32>
    %122 = arith.addf %118, %121 : vector<8x1xf32>
    %123 = math.rsqrt %122 : vector<8x1xf32>
    %124 = vector.broadcast %123 : vector<8x1xf32> to vector<8x32xf32>
    %125 = arith.mulf %120, %124 : vector<8x32xf32>
    %126 = vector.broadcast %103 : vector<1x32xf32> to vector<8x32xf32>
    %127 = arith.mulf %125, %126 : vector<8x32xf32>
    %128 = vector.broadcast %105 : vector<1x32xf32> to vector<8x32xf32>
    %129 = arith.addf %127, %128 : vector<8x32xf32>
    %c0_55 = arith.constant 0 : index
    %c0_56 = arith.constant 0 : index
    %c0_57 = arith.constant 0 : index
    %130 = vector.load %arg10[%c0_55, %c0_56, %c0_57] : memref<2x32x64xf32, #tpu.memory_space<vmem>>, vector<1x32x64xf32>
    %131 = vector.shape_cast %130 : vector<1x32x64xf32> to vector<32x64xf32>
    %cst_58 = arith.constant dense<0.000000e+00> : vector<8x64xf32>
    %132 = tpu.matmul %129, %131, %cst_58 {dimension_numbers = #tpu.dot_dimension_numbers<[1], [0], [0], [1], [0, 0, 1, 1], [], []>} : vector<8x32xf32>, vector<32x64xf32>, vector<8x64xf32> -> vector<8x64xf32>
    %c0_59 = arith.constant 0 : index
    %c0_60 = arith.constant 0 : index
    %c0_61 = arith.constant 0 : index
    %133 = vector.load %arg11[%c0_59, %c0_60, %c0_61] : memref<2x1x64xf32, #tpu.memory_space<vmem>>, vector<1x1x64xf32>
    %134 = vector.shape_cast %133 : vector<1x1x64xf32> to vector<1x64xf32>
    %135 = vector.broadcast %134 : vector<1x64xf32> to vector<8x64xf32>
    %136 = arith.addf %132, %135 : vector<8x64xf32>
    %cst_62 = arith.constant 0.000000e+00 : f32
    %137 = vector.broadcast %cst_62 : f32 to vector<8x64xf32>
    %138 = arith.maximumf %136, %137 : vector<8x64xf32>
    %c0_63 = arith.constant 0 : index
    %c0_64 = arith.constant 0 : index
    %c0_65 = arith.constant 0 : index
    %139 = vector.load %arg12[%c0_63, %c0_64, %c0_65] : memref<2x64x32xf32, #tpu.memory_space<vmem>>, vector<1x64x32xf32>
    %140 = vector.shape_cast %139 : vector<1x64x32xf32> to vector<64x32xf32>
    %cst_66 = arith.constant dense<0.000000e+00> : vector<8x32xf32>
    %141 = tpu.matmul %138, %140, %cst_66 {dimension_numbers = #tpu.dot_dimension_numbers<[1], [0], [0], [1], [0, 0, 1, 1], [], []>} : vector<8x64xf32>, vector<64x32xf32>, vector<8x32xf32> -> vector<8x32xf32>
    %c0_67 = arith.constant 0 : index
    %c0_68 = arith.constant 0 : index
    %c0_69 = arith.constant 0 : index
    %142 = vector.load %arg13[%c0_67, %c0_68, %c0_69] : memref<2x1x32xf32, #tpu.memory_space<vmem>>, vector<1x1x32xf32>
    %143 = vector.shape_cast %142 : vector<1x1x32xf32> to vector<1x32xf32>
    %144 = vector.broadcast %143 : vector<1x32xf32> to vector<8x32xf32>
    %145 = arith.addf %141, %144 : vector<8x32xf32>
    %146 = arith.addf %129, %145 : vector<8x32xf32>
    %c0_70 = arith.constant 0 : index
    %c0_71 = arith.constant 0 : index
    %c0_72 = arith.constant 0 : index
    %147 = vector.load %arg14[%c0_70, %c0_71, %c0_72] : memref<2x1x32xf32, #tpu.memory_space<vmem>>, vector<1x1x32xf32>
    %148 = vector.shape_cast %147 : vector<1x1x32xf32> to vector<1x32xf32>
    %c0_73 = arith.constant 0 : index
    %c0_74 = arith.constant 0 : index
    %c0_75 = arith.constant 0 : index
    %149 = vector.load %arg15[%c0_73, %c0_74, %c0_75] : memref<2x1x32xf32, #tpu.memory_space<vmem>>, vector<1x1x32xf32>
    %150 = vector.shape_cast %149 : vector<1x1x32xf32> to vector<1x32xf32>
    %cst_76 = arith.constant dense<0.000000e+00> : vector<8xf32>
    %151 = vector.multi_reduction <add>, %146, %cst_76 [1] : vector<8x32xf32> to vector<8xf32>
    %152 = vector.shape_cast %151 : vector<8xf32> to vector<8x1xf32>
    %cst_77 = arith.constant 3.200000e+01 : f32
    %153 = vector.broadcast %cst_77 : f32 to vector<8x1xf32>
    %154 = arith.divf %152, %153 : vector<8x1xf32>
    %155 = vector.broadcast %154 : vector<8x1xf32> to vector<8x32xf32>
    %156 = arith.subf %146, %155 : vector<8x32xf32>
    %157 = vector.broadcast %154 : vector<8x1xf32> to vector<8x32xf32>
    %158 = arith.subf %146, %157 : vector<8x32xf32>
    %159 = arith.mulf %156, %158 : vector<8x32xf32>
    %cst_78 = arith.constant dense<0.000000e+00> : vector<8xf32>
    %160 = vector.multi_reduction <add>, %159, %cst_78 [1] : vector<8x32xf32> to vector<8xf32>
    %161 = vector.shape_cast %160 : vector<8xf32> to vector<8x1xf32>
    %cst_79 = arith.constant 3.200000e+01 : f32
    %162 = vector.broadcast %cst_79 : f32 to vector<8x1xf32>
    %163 = arith.divf %161, %162 : vector<8x1xf32>
    %164 = vector.broadcast %154 : vector<8x1xf32> to vector<8x32xf32>
    %165 = arith.subf %146, %164 : vector<8x32xf32>
    %cst_80 = arith.constant 9.99999974E-6 : f32
    %166 = vector.broadcast %cst_80 : f32 to vector<8x1xf32>
    %167 = arith.addf %163, %166 : vector<8x1xf32>
    %168 = math.rsqrt %167 : vector<8x1xf32>
    %169 = vector.broadcast %168 : vector<8x1xf32> to vector<8x32xf32>
    %170 = arith.mulf %165, %169 : vector<8x32xf32>
    %171 = vector.broadcast %148 : vector<1x32xf32> to vector<8x32xf32>
    %172 = arith.mulf %170, %171 : vector<8x32xf32>
    %173 = vector.broadcast %150 : vector<1x32xf32> to vector<8x32xf32>
    %174 = arith.addf %172, %173 : vector<8x32xf32>
    %c1 = arith.constant 1 : index
    %c0_81 = arith.constant 0 : index
    %c0_82 = arith.constant 0 : index
    %175 = vector.load %arg4[%c1, %c0_81, %c0_82] : memref<2x32x96xf32, #tpu.memory_space<vmem>>, vector<1x32x96xf32>
    %176 = vector.shape_cast %175 : vector<1x32x96xf32> to vector<32x96xf32>
    %cst_83 = arith.constant dense<0.000000e+00> : vector<8x96xf32>
    %177 = tpu.matmul %174, %176, %cst_83 {dimension_numbers = #tpu.dot_dimension_numbers<[1], [0], [0], [1], [0, 0, 1, 1], [], []>} : vector<8x32xf32>, vector<32x96xf32>, vector<8x96xf32> -> vector<8x96xf32>
    %c1_84 = arith.constant 1 : index
    %c0_85 = arith.constant 0 : index
    %c0_86 = arith.constant 0 : index
    %178 = vector.load %arg5[%c1_84, %c0_85, %c0_86] : memref<2x1x96xf32, #tpu.memory_space<vmem>>, vector<1x1x96xf32>
    %179 = vector.shape_cast %178 : vector<1x1x96xf32> to vector<1x96xf32>
    %180 = vector.broadcast %179 : vector<1x96xf32> to vector<8x96xf32>
    %181 = arith.addf %177, %180 : vector<8x96xf32>
    %c1_87 = arith.constant 1 : index
    %c0_88 = arith.constant 0 : index
    %c0_89 = arith.constant 0 : index
    %182 = vector.load %arg6[%c1_87, %c0_88, %c0_89] : memref<2x32x32xf32, #tpu.memory_space<vmem>>, vector<1x32x32xf32>
    %183 = vector.shape_cast %182 : vector<1x32x32xf32> to vector<32x32xf32>
    %cst_90 = arith.constant 0.000000e+00 : f32
    %184 = vector.broadcast %cst_90 : f32 to vector<8x32xf32>
    %185 = vector.extract_strided_slice %181 {offsets = [0, 0], sizes = [8, 8], strides = [1, 1]} : vector<8x96xf32> to vector<8x8xf32>
    %186 = vector.extract_strided_slice %181 {offsets = [0, 32], sizes = [8, 8], strides = [1, 1]} : vector<8x96xf32> to vector<8x8xf32>
    %187 = vector.extract_strided_slice %181 {offsets = [0, 64], sizes = [8, 8], strides = [1, 1]} : vector<8x96xf32> to vector<8x8xf32>
    "tpu.trace_start"() <{level = 10 : i32, message = "qd,kd->qk"}> : () -> ()
    %cst_91 = arith.constant dense<0.000000e+00> : vector<8x8xf32>
    %188 = tpu.matmul %185, %186, %cst_91 {dimension_numbers = #tpu.dot_dimension_numbers<[1], [1], [0], [0], [0, 0, 1, 0], [], []>} : vector<8x8xf32>, vector<8x8xf32>, vector<8x8xf32> -> vector<8x8xf32>
    "tpu.trace_stop"() : () -> ()
    %cst_92 = arith.constant 0.353553385 : f32
    %189 = vector.broadcast %cst_92 : f32 to vector<8x8xf32>
    %190 = arith.mulf %188, %189 : vector<8x8xf32>
    %cst_93 = arith.constant dense<0xFF800000> : vector<8xf32>
    %191 = vector.multi_reduction <maximumf>, %190, %cst_93 [1] : vector<8x8xf32> to vector<8xf32>
    %192 = vector.shape_cast %191 : vector<8xf32> to vector<8x1xf32>
    %193 = vector.broadcast %192 : vector<8x1xf32> to vector<8x8xf32>
    %194 = arith.subf %190, %193 : vector<8x8xf32>
    %195 = math.exp %194 : vector<8x8xf32>
    %cst_94 = arith.constant dense<0.000000e+00> : vector<8xf32>
    %196 = vector.multi_reduction <add>, %195, %cst_94 [1] : vector<8x8xf32> to vector<8xf32>
    %197 = vector.shape_cast %196 : vector<8xf32> to vector<8x1xf32>
    %198 = tpu.reciprocal %197 : vector<8x1xf32> -> vector<8x1xf32>
    %199 = vector.broadcast %198 : vector<8x1xf32> to vector<8x8xf32>
    %200 = arith.mulf %195, %199 : vector<8x8xf32>
    %cst_95 = arith.constant dense<0.000000e+00> : vector<8x8xf32>
    %201 = tpu.matmul %200, %187, %cst_95 {dimension_numbers = #tpu.dot_dimension_numbers<[1], [0], [0], [1], [0, 0, 1, 1], [], []>} : vector<8x8xf32>, vector<8x8xf32>, vector<8x8xf32> -> vector<8x8xf32>
    %202 = vector.extract_strided_slice %183 {offsets = [0, 0], sizes = [8, 32], strides = [1, 1]} : vector<32x32xf32> to vector<8x32xf32>
    %cst_96 = arith.constant dense<0.000000e+00> : vector<8x32xf32>
    %203 = tpu.matmul %201, %202, %cst_96 {dimension_numbers = #tpu.dot_dimension_numbers<[1], [0], [0], [1], [0, 0, 1, 1], [], []>} : vector<8x8xf32>, vector<8x32xf32>, vector<8x32xf32> -> vector<8x32xf32>
    %204 = arith.addf %184, %203 : vector<8x32xf32>
    %205 = vector.extract_strided_slice %181 {offsets = [0, 8], sizes = [8, 8], strides = [1, 1]} : vector<8x96xf32> to vector<8x8xf32>
    %206 = vector.extract_strided_slice %181 {offsets = [0, 40], sizes = [8, 8], strides = [1, 1]} : vector<8x96xf32> to vector<8x8xf32>
    %207 = vector.extract_strided_slice %181 {offsets = [0, 72], sizes = [8, 8], strides = [1, 1]} : vector<8x96xf32> to vector<8x8xf32>
    "tpu.trace_start"() <{level = 10 : i32, message = "qd,kd->qk"}> : () -> ()
    %cst_97 = arith.constant dense<0.000000e+00> : vector<8x8xf32>
    %208 = tpu.matmul %205, %206, %cst_97 {dimension_numbers = #tpu.dot_dimension_numbers<[1], [1], [0], [0], [0, 0, 1, 0], [], []>} : vector<8x8xf32>, vector<8x8xf32>, vector<8x8xf32> -> vector<8x8xf32>
    "tpu.trace_stop"() : () -> ()
    %cst_98 = arith.constant 0.353553385 : f32
    %209 = vector.broadcast %cst_98 : f32 to vector<8x8xf32>
    %210 = arith.mulf %208, %209 : vector<8x8xf32>
    %cst_99 = arith.constant dense<0xFF800000> : vector<8xf32>
    %211 = vector.multi_reduction <maximumf>, %210, %cst_99 [1] : vector<8x8xf32> to vector<8xf32>
    %212 = vector.shape_cast %211 : vector<8xf32> to vector<8x1xf32>
    %213 = vector.broadcast %212 : vector<8x1xf32> to vector<8x8xf32>
    %214 = arith.subf %210, %213 : vector<8x8xf32>
    %215 = math.exp %214 : vector<8x8xf32>
    %cst_100 = arith.constant dense<0.000000e+00> : vector<8xf32>
    %216 = vector.multi_reduction <add>, %215, %cst_100 [1] : vector<8x8xf32> to vector<8xf32>
    %217 = vector.shape_cast %216 : vector<8xf32> to vector<8x1xf32>
    %218 = tpu.reciprocal %217 : vector<8x1xf32> -> vector<8x1xf32>
    %219 = vector.broadcast %218 : vector<8x1xf32> to vector<8x8xf32>
    %220 = arith.mulf %215, %219 : vector<8x8xf32>
    %cst_101 = arith.constant dense<0.000000e+00> : vector<8x8xf32>
    %221 = tpu.matmul %220, %207, %cst_101 {dimension_numbers = #tpu.dot_dimension_numbers<[1], [0], [0], [1], [0, 0, 1, 1], [], []>} : vector<8x8xf32>, vector<8x8xf32>, vector<8x8xf32> -> vector<8x8xf32>
    %222 = vector.extract_strided_slice %183 {offsets = [8, 0], sizes = [8, 32], strides = [1, 1]} : vector<32x32xf32> to vector<8x32xf32>
    %cst_102 = arith.constant dense<0.000000e+00> : vector<8x32xf32>
    %223 = tpu.matmul %221, %222, %cst_102 {dimension_numbers = #tpu.dot_dimension_numbers<[1], [0], [0], [1], [0, 0, 1, 1], [], []>} : vector<8x8xf32>, vector<8x32xf32>, vector<8x32xf32> -> vector<8x32xf32>
    %224 = arith.addf %204, %223 : vector<8x32xf32>
    %225 = vector.extract_strided_slice %181 {offsets = [0, 16], sizes = [8, 8], strides = [1, 1]} : vector<8x96xf32> to vector<8x8xf32>
    %226 = vector.extract_strided_slice %181 {offsets = [0, 48], sizes = [8, 8], strides = [1, 1]} : vector<8x96xf32> to vector<8x8xf32>
    %227 = vector.extract_strided_slice %181 {offsets = [0, 80], sizes = [8, 8], strides = [1, 1]} : vector<8x96xf32> to vector<8x8xf32>
    "tpu.trace_start"() <{level = 10 : i32, message = "qd,kd->qk"}> : () -> ()
    %cst_103 = arith.constant dense<0.000000e+00> : vector<8x8xf32>
    %228 = tpu.matmul %225, %226, %cst_103 {dimension_numbers = #tpu.dot_dimension_numbers<[1], [1], [0], [0], [0, 0, 1, 0], [], []>} : vector<8x8xf32>, vector<8x8xf32>, vector<8x8xf32> -> vector<8x8xf32>
    "tpu.trace_stop"() : () -> ()
    %cst_104 = arith.constant 0.353553385 : f32
    %229 = vector.broadcast %cst_104 : f32 to vector<8x8xf32>
    %230 = arith.mulf %228, %229 : vector<8x8xf32>
    %cst_105 = arith.constant dense<0xFF800000> : vector<8xf32>
    %231 = vector.multi_reduction <maximumf>, %230, %cst_105 [1] : vector<8x8xf32> to vector<8xf32>
    %232 = vector.shape_cast %231 : vector<8xf32> to vector<8x1xf32>
    %233 = vector.broadcast %232 : vector<8x1xf32> to vector<8x8xf32>
    %234 = arith.subf %230, %233 : vector<8x8xf32>
    %235 = math.exp %234 : vector<8x8xf32>
    %cst_106 = arith.constant dense<0.000000e+00> : vector<8xf32>
    %236 = vector.multi_reduction <add>, %235, %cst_106 [1] : vector<8x8xf32> to vector<8xf32>
    %237 = vector.shape_cast %236 : vector<8xf32> to vector<8x1xf32>
    %238 = tpu.reciprocal %237 : vector<8x1xf32> -> vector<8x1xf32>
    %239 = vector.broadcast %238 : vector<8x1xf32> to vector<8x8xf32>
    %240 = arith.mulf %235, %239 : vector<8x8xf32>
    %cst_107 = arith.constant dense<0.000000e+00> : vector<8x8xf32>
    %241 = tpu.matmul %240, %227, %cst_107 {dimension_numbers = #tpu.dot_dimension_numbers<[1], [0], [0], [1], [0, 0, 1, 1], [], []>} : vector<8x8xf32>, vector<8x8xf32>, vector<8x8xf32> -> vector<8x8xf32>
    %242 = vector.extract_strided_slice %183 {offsets = [16, 0], sizes = [8, 32], strides = [1, 1]} : vector<32x32xf32> to vector<8x32xf32>
    %cst_108 = arith.constant dense<0.000000e+00> : vector<8x32xf32>
    %243 = tpu.matmul %241, %242, %cst_108 {dimension_numbers = #tpu.dot_dimension_numbers<[1], [0], [0], [1], [0, 0, 1, 1], [], []>} : vector<8x8xf32>, vector<8x32xf32>, vector<8x32xf32> -> vector<8x32xf32>
    %244 = arith.addf %224, %243 : vector<8x32xf32>
    %245 = vector.extract_strided_slice %181 {offsets = [0, 24], sizes = [8, 8], strides = [1, 1]} : vector<8x96xf32> to vector<8x8xf32>
    %246 = vector.extract_strided_slice %181 {offsets = [0, 56], sizes = [8, 8], strides = [1, 1]} : vector<8x96xf32> to vector<8x8xf32>
    %247 = vector.extract_strided_slice %181 {offsets = [0, 88], sizes = [8, 8], strides = [1, 1]} : vector<8x96xf32> to vector<8x8xf32>
    "tpu.trace_start"() <{level = 10 : i32, message = "qd,kd->qk"}> : () -> ()
    %cst_109 = arith.constant dense<0.000000e+00> : vector<8x8xf32>
    %248 = tpu.matmul %245, %246, %cst_109 {dimension_numbers = #tpu.dot_dimension_numbers<[1], [1], [0], [0], [0, 0, 1, 0], [], []>} : vector<8x8xf32>, vector<8x8xf32>, vector<8x8xf32> -> vector<8x8xf32>
    "tpu.trace_stop"() : () -> ()
    %cst_110 = arith.constant 0.353553385 : f32
    %249 = vector.broadcast %cst_110 : f32 to vector<8x8xf32>
    %250 = arith.mulf %248, %249 : vector<8x8xf32>
    %cst_111 = arith.constant dense<0xFF800000> : vector<8xf32>
    %251 = vector.multi_reduction <maximumf>, %250, %cst_111 [1] : vector<8x8xf32> to vector<8xf32>
    %252 = vector.shape_cast %251 : vector<8xf32> to vector<8x1xf32>
    %253 = vector.broadcast %252 : vector<8x1xf32> to vector<8x8xf32>
    %254 = arith.subf %250, %253 : vector<8x8xf32>
    %255 = math.exp %254 : vector<8x8xf32>
    %cst_112 = arith.constant dense<0.000000e+00> : vector<8xf32>
    %256 = vector.multi_reduction <add>, %255, %cst_112 [1] : vector<8x8xf32> to vector<8xf32>
    %257 = vector.shape_cast %256 : vector<8xf32> to vector<8x1xf32>
    %258 = tpu.reciprocal %257 : vector<8x1xf32> -> vector<8x1xf32>
    %259 = vector.broadcast %258 : vector<8x1xf32> to vector<8x8xf32>
    %260 = arith.mulf %255, %259 : vector<8x8xf32>
    %cst_113 = arith.constant dense<0.000000e+00> : vector<8x8xf32>
    %261 = tpu.matmul %260, %247, %cst_113 {dimension_numbers = #tpu.dot_dimension_numbers<[1], [0], [0], [1], [0, 0, 1, 1], [], []>} : vector<8x8xf32>, vector<8x8xf32>, vector<8x8xf32> -> vector<8x8xf32>
    %262 = vector.extract_strided_slice %183 {offsets = [24, 0], sizes = [8, 32], strides = [1, 1]} : vector<32x32xf32> to vector<8x32xf32>
    %cst_114 = arith.constant dense<0.000000e+00> : vector<8x32xf32>
    %263 = tpu.matmul %261, %262, %cst_114 {dimension_numbers = #tpu.dot_dimension_numbers<[1], [0], [0], [1], [0, 0, 1, 1], [], []>} : vector<8x8xf32>, vector<8x32xf32>, vector<8x32xf32> -> vector<8x32xf32>
    %264 = arith.addf %244, %263 : vector<8x32xf32>
    %c1_115 = arith.constant 1 : index
    %c0_116 = arith.constant 0 : index
    %c0_117 = arith.constant 0 : index
    %265 = vector.load %arg7[%c1_115, %c0_116, %c0_117] : memref<2x1x32xf32, #tpu.memory_space<vmem>>, vector<1x1x32xf32>
    %266 = vector.shape_cast %265 : vector<1x1x32xf32> to vector<1x32xf32>
    %267 = vector.broadcast %266 : vector<1x32xf32> to vector<8x32xf32>
    %268 = arith.addf %264, %267 : vector<8x32xf32>
    %269 = arith.addf %174, %268 : vector<8x32xf32>
    %c1_118 = arith.constant 1 : index
    %c0_119 = arith.constant 0 : index
    %c0_120 = arith.constant 0 : index
    %270 = vector.load %arg8[%c1_118, %c0_119, %c0_120] : memref<2x1x32xf32, #tpu.memory_space<vmem>>, vector<1x1x32xf32>
    %271 = vector.shape_cast %270 : vector<1x1x32xf32> to vector<1x32xf32>
    %c1_121 = arith.constant 1 : index
    %c0_122 = arith.constant 0 : index
    %c0_123 = arith.constant 0 : index
    %272 = vector.load %arg9[%c1_121, %c0_122, %c0_123] : memref<2x1x32xf32, #tpu.memory_space<vmem>>, vector<1x1x32xf32>
    %273 = vector.shape_cast %272 : vector<1x1x32xf32> to vector<1x32xf32>
    %cst_124 = arith.constant dense<0.000000e+00> : vector<8xf32>
    %274 = vector.multi_reduction <add>, %269, %cst_124 [1] : vector<8x32xf32> to vector<8xf32>
    %275 = vector.shape_cast %274 : vector<8xf32> to vector<8x1xf32>
    %cst_125 = arith.constant 3.200000e+01 : f32
    %276 = vector.broadcast %cst_125 : f32 to vector<8x1xf32>
    %277 = arith.divf %275, %276 : vector<8x1xf32>
    %278 = vector.broadcast %277 : vector<8x1xf32> to vector<8x32xf32>
    %279 = arith.subf %269, %278 : vector<8x32xf32>
    %280 = vector.broadcast %277 : vector<8x1xf32> to vector<8x32xf32>
    %281 = arith.subf %269, %280 : vector<8x32xf32>
    %282 = arith.mulf %279, %281 : vector<8x32xf32>
    %cst_126 = arith.constant dense<0.000000e+00> : vector<8xf32>
    %283 = vector.multi_reduction <add>, %282, %cst_126 [1] : vector<8x32xf32> to vector<8xf32>
    %284 = vector.shape_cast %283 : vector<8xf32> to vector<8x1xf32>
    %cst_127 = arith.constant 3.200000e+01 : f32
    %285 = vector.broadcast %cst_127 : f32 to vector<8x1xf32>
    %286 = arith.divf %284, %285 : vector<8x1xf32>
    %287 = vector.broadcast %277 : vector<8x1xf32> to vector<8x32xf32>
    %288 = arith.subf %269, %287 : vector<8x32xf32>
    %cst_128 = arith.constant 9.99999974E-6 : f32
    %289 = vector.broadcast %cst_128 : f32 to vector<8x1xf32>
    %290 = arith.addf %286, %289 : vector<8x1xf32>
    %291 = math.rsqrt %290 : vector<8x1xf32>
    %292 = vector.broadcast %291 : vector<8x1xf32> to vector<8x32xf32>
    %293 = arith.mulf %288, %292 : vector<8x32xf32>
    %294 = vector.broadcast %271 : vector<1x32xf32> to vector<8x32xf32>
    %295 = arith.mulf %293, %294 : vector<8x32xf32>
    %296 = vector.broadcast %273 : vector<1x32xf32> to vector<8x32xf32>
    %297 = arith.addf %295, %296 : vector<8x32xf32>
    %c1_129 = arith.constant 1 : index
    %c0_130 = arith.constant 0 : index
    %c0_131 = arith.constant 0 : index
    %298 = vector.load %arg10[%c1_129, %c0_130, %c0_131] : memref<2x32x64xf32, #tpu.memory_space<vmem>>, vector<1x32x64xf32>
    %299 = vector.shape_cast %298 : vector<1x32x64xf32> to vector<32x64xf32>
    %cst_132 = arith.constant dense<0.000000e+00> : vector<8x64xf32>
    %300 = tpu.matmul %297, %299, %cst_132 {dimension_numbers = #tpu.dot_dimension_numbers<[1], [0], [0], [1], [0, 0, 1, 1], [], []>} : vector<8x32xf32>, vector<32x64xf32>, vector<8x64xf32> -> vector<8x64xf32>
    %c1_133 = arith.constant 1 : index
    %c0_134 = arith.constant 0 : index
    %c0_135 = arith.constant 0 : index
    %301 = vector.load %arg11[%c1_133, %c0_134, %c0_135] : memref<2x1x64xf32, #tpu.memory_space<vmem>>, vector<1x1x64xf32>
    %302 = vector.shape_cast %301 : vector<1x1x64xf32> to vector<1x64xf32>
    %303 = vector.broadcast %302 : vector<1x64xf32> to vector<8x64xf32>
    %304 = arith.addf %300, %303 : vector<8x64xf32>
    %cst_136 = arith.constant 0.000000e+00 : f32
    %305 = vector.broadcast %cst_136 : f32 to vector<8x64xf32>
    %306 = arith.maximumf %304, %305 : vector<8x64xf32>
    %c1_137 = arith.constant 1 : index
    %c0_138 = arith.constant 0 : index
    %c0_139 = arith.constant 0 : index
    %307 = vector.load %arg12[%c1_137, %c0_138, %c0_139] : memref<2x64x32xf32, #tpu.memory_space<vmem>>, vector<1x64x32xf32>
    %308 = vector.shape_cast %307 : vector<1x64x32xf32> to vector<64x32xf32>
    %cst_140 = arith.constant dense<0.000000e+00> : vector<8x32xf32>
    %309 = tpu.matmul %306, %308, %cst_140 {dimension_numbers = #tpu.dot_dimension_numbers<[1], [0], [0], [1], [0, 0, 1, 1], [], []>} : vector<8x64xf32>, vector<64x32xf32>, vector<8x32xf32> -> vector<8x32xf32>
    %c1_141 = arith.constant 1 : index
    %c0_142 = arith.constant 0 : index
    %c0_143 = arith.constant 0 : index
    %310 = vector.load %arg13[%c1_141, %c0_142, %c0_143] : memref<2x1x32xf32, #tpu.memory_space<vmem>>, vector<1x1x32xf32>
    %311 = vector.shape_cast %310 : vector<1x1x32xf32> to vector<1x32xf32>
    %312 = vector.broadcast %311 : vector<1x32xf32> to vector<8x32xf32>
    %313 = arith.addf %309, %312 : vector<8x32xf32>
    %314 = arith.addf %297, %313 : vector<8x32xf32>
    %c1_144 = arith.constant 1 : index
    %c0_145 = arith.constant 0 : index
    %c0_146 = arith.constant 0 : index
    %315 = vector.load %arg14[%c1_144, %c0_145, %c0_146] : memref<2x1x32xf32, #tpu.memory_space<vmem>>, vector<1x1x32xf32>
    %316 = vector.shape_cast %315 : vector<1x1x32xf32> to vector<1x32xf32>
    %c1_147 = arith.constant 1 : index
    %c0_148 = arith.constant 0 : index
    %c0_149 = arith.constant 0 : index
    %317 = vector.load %arg15[%c1_147, %c0_148, %c0_149] : memref<2x1x32xf32, #tpu.memory_space<vmem>>, vector<1x1x32xf32>
    %318 = vector.shape_cast %317 : vector<1x1x32xf32> to vector<1x32xf32>
    %cst_150 = arith.constant dense<0.000000e+00> : vector<8xf32>
    %319 = vector.multi_reduction <add>, %314, %cst_150 [1] : vector<8x32xf32> to vector<8xf32>
    %320 = vector.shape_cast %319 : vector<8xf32> to vector<8x1xf32>
    %cst_151 = arith.constant 3.200000e+01 : f32
    %321 = vector.broadcast %cst_151 : f32 to vector<8x1xf32>
    %322 = arith.divf %320, %321 : vector<8x1xf32>
    %323 = vector.broadcast %322 : vector<8x1xf32> to vector<8x32xf32>
    %324 = arith.subf %314, %323 : vector<8x32xf32>
    %325 = vector.broadcast %322 : vector<8x1xf32> to vector<8x32xf32>
    %326 = arith.subf %314, %325 : vector<8x32xf32>
    %327 = arith.mulf %324, %326 : vector<8x32xf32>
    %cst_152 = arith.constant dense<0.000000e+00> : vector<8xf32>
    %328 = vector.multi_reduction <add>, %327, %cst_152 [1] : vector<8x32xf32> to vector<8xf32>
    %329 = vector.shape_cast %328 : vector<8xf32> to vector<8x1xf32>
    %cst_153 = arith.constant 3.200000e+01 : f32
    %330 = vector.broadcast %cst_153 : f32 to vector<8x1xf32>
    %331 = arith.divf %329, %330 : vector<8x1xf32>
    %332 = vector.broadcast %322 : vector<8x1xf32> to vector<8x32xf32>
    %333 = arith.subf %314, %332 : vector<8x32xf32>
    %cst_154 = arith.constant 9.99999974E-6 : f32
    %334 = vector.broadcast %cst_154 : f32 to vector<8x1xf32>
    %335 = arith.addf %331, %334 : vector<8x1xf32>
    %336 = math.rsqrt %335 : vector<8x1xf32>
    %337 = vector.broadcast %336 : vector<8x1xf32> to vector<8x32xf32>
    %338 = arith.mulf %333, %337 : vector<8x32xf32>
    %339 = vector.broadcast %316 : vector<1x32xf32> to vector<8x32xf32>
    %340 = arith.mulf %338, %339 : vector<8x32xf32>
    %341 = vector.broadcast %318 : vector<1x32xf32> to vector<8x32xf32>
    %342 = arith.addf %340, %341 : vector<8x32xf32>
    %cst_155 = arith.constant dense<0.000000e+00> : vector<32xf32>
    %343 = vector.multi_reduction <add>, %342, %cst_155 [0] : vector<8x32xf32> to vector<32xf32>
    %344 = vector.shape_cast %343 : vector<32xf32> to vector<1x32xf32>
    %cst_156 = arith.constant 8.000000e+00 : f32
    %345 = vector.broadcast %cst_156 : f32 to vector<1x32xf32>
    %346 = arith.divf %344, %345 : vector<1x32xf32>
    %c0_157 = arith.constant 0 : index
    %c0_158 = arith.constant 0 : index
    %347 = vector.load %arg16[%c0_157, %c0_158] : memref<32x2xf32, #tpu.memory_space<vmem>>, vector<32x2xf32>
    %cst_159 = arith.constant dense<0.000000e+00> : vector<1x2xf32>
    %348 = tpu.matmul %346, %347, %cst_159 {dimension_numbers = #tpu.dot_dimension_numbers<[1], [0], [0], [1], [0, 0, 1, 1], [], []>} : vector<1x32xf32>, vector<32x2xf32>, vector<1x2xf32> -> vector<1x2xf32>
    %c0_160 = arith.constant 0 : index
    %c0_161 = arith.constant 0 : index
    %349 = vector.load %arg17[%c0_160, %c0_161] : memref<1x2xf32, #tpu.memory_space<vmem>>, vector<1x2xf32>
    %350 = arith.addf %348, %349 : vector<1x2xf32>
    %c0_162 = arith.constant 0 : index
    %c0_163 = arith.constant 0 : index
    %c0_164 = arith.constant 0 : index
    %351 = vector.load %arg18[%c0_162, %c0_163, %c0_164] : memref<1x1x32xf32, #tpu.memory_space<vmem>>, vector<1x1x32xf32>
    %352 = vector.shape_cast %351 : vector<1x1x32xf32> to vector<1x32xf32>
    %353 = vector.shape_cast %346 : vector<1x32xf32> to vector<1x1x32xf32>
    tpu.vector_store %arg18[%c0_162, %c0_163, %c0_164], %353 {strides = array<i32>} : memref<1x1x32xf32, #tpu.memory_space<vmem>>, vector<1x1x32xf32>,
    %c0_165 = arith.constant 0 : index
    %c0_166 = arith.constant 0 : index
    %c0_167 = arith.constant 0 : index
    %354 = vector.load %arg19[%c0_165, %c0_166, %c0_167] : memref<1x1x2xf32, #tpu.memory_space<vmem>>, vector<1x1x2xf32>
    %355 = vector.shape_cast %354 : vector<1x1x2xf32> to vector<1x2xf32>
    %356 = vector.shape_cast %350 : vector<1x2xf32> to vector<1x1x2xf32>
    tpu.vector_store %arg19[%c0_165, %c0_166, %c0_167], %356 {strides = array<i32>} : memref<1x1x2xf32, #tpu.memory_space<vmem>>, vector<1x1x2xf32>,
    return
  }
  func.func @transform_0(%arg0: i32) -> (i32, i32, i32) {
    %c0_i32 = arith.constant 0 : i32
    %c0_i32_0 = arith.constant 0 : i32
    %c0_i32_1 = arith.constant 0 : i32
    return %arg0, %c0_i32, %c0_i32_0 : i32, i32, i32
  }
  func.func @transform_1(%arg0: i32) -> (i32, i32) {
    %c0_i32 = arith.constant 0 : i32
    %c0_i32_0 = arith.constant 0 : i32
    %c0_i32_1 = arith.constant 0 : i32
    return %c0_i32, %c0_i32_0 : i32, i32
  }
  func.func @transform_2(%arg0: i32) -> (i32, i32) {
    %c0_i32 = arith.constant 0 : i32
    %c0_i32_0 = arith.constant 0 : i32
    %c0_i32_1 = arith.constant 0 : i32
    return %c0_i32, %c0_i32_0 : i32, i32
  }
  func.func @transform_3(%arg0: i32) -> (i32, i32, i32) {
    %c0_i32 = arith.constant 0 : i32
    %c0_i32_0 = arith.constant 0 : i32
    %c0_i32_1 = arith.constant 0 : i32
    %c0_i32_2 = arith.constant 0 : i32
    return %c0_i32, %c0_i32_0, %c0_i32_1 : i32, i32, i32
  }
  func.func @transform_4(%arg0: i32) -> (i32, i32, i32) {
    %c0_i32 = arith.constant 0 : i32
    %c0_i32_0 = arith.constant 0 : i32
    %c0_i32_1 = arith.constant 0 : i32
    %c0_i32_2 = arith.constant 0 : i32
    return %c0_i32, %c0_i32_0, %c0_i32_1 : i32, i32, i32
  }
  func.func @transform_5(%arg0: i32) -> (i32, i32, i32) {
    %c0_i32 = arith.constant 0 : i32
    %c0_i32_0 = arith.constant 0 : i32
    %c0_i32_1 = arith.constant 0 : i32
    %c0_i32_2 = arith.constant 0 : i32
    return %c0_i32, %c0_i32_0, %c0_i32_1 : i32, i32, i32
  }
  func.func @transform_6(%arg0: i32) -> (i32, i32, i32) {
    %c0_i32 = arith.constant 0 : i32
    %c0_i32_0 = arith.constant 0 : i32
    %c0_i32_1 = arith.constant 0 : i32
    %c0_i32_2 = arith.constant 0 : i32
    return %c0_i32, %c0_i32_0, %c0_i32_1 : i32, i32, i32
  }
  func.func @transform_7(%arg0: i32) -> (i32, i32, i32) {
    %c0_i32 = arith.constant 0 : i32
    %c0_i32_0 = arith.constant 0 : i32
    %c0_i32_1 = arith.constant 0 : i32
    %c0_i32_2 = arith.constant 0 : i32
    return %c0_i32, %c0_i32_0, %c0_i32_1 : i32, i32, i32
  }
  func.func @transform_8(%arg0: i32) -> (i32, i32, i32) {
    %c0_i32 = arith.constant 0 : i32
    %c0_i32_0 = arith.constant 0 : i32
    %c0_i32_1 = arith.constant 0 : i32
    %c0_i32_2 = arith.constant 0 : i32
    return %c0_i32, %c0_i32_0, %c0_i32_1 : i32, i32, i32
  }
  func.func @transform_9(%arg0: i32) -> (i32, i32, i32) {
    %c0_i32 = arith.constant 0 : i32
    %c0_i32_0 = arith.constant 0 : i32
    %c0_i32_1 = arith.constant 0 : i32
    %c0_i32_2 = arith.constant 0 : i32
    return %c0_i32, %c0_i32_0, %c0_i32_1 : i32, i32, i32
  }
  func.func @transform_10(%arg0: i32) -> (i32, i32, i32) {
    %c0_i32 = arith.constant 0 : i32
    %c0_i32_0 = arith.constant 0 : i32
    %c0_i32_1 = arith.constant 0 : i32
    %c0_i32_2 = arith.constant 0 : i32
    return %c0_i32, %c0_i32_0, %c0_i32_1 : i32, i32, i32
  }
  func.func @transform_11(%arg0: i32) -> (i32, i32, i32) {
    %c0_i32 = arith.constant 0 : i32
    %c0_i32_0 = arith.constant 0 : i32
    %c0_i32_1 = arith.constant 0 : i32
    %c0_i32_2 = arith.constant 0 : i32
    return %c0_i32, %c0_i32_0, %c0_i32_1 : i32, i32, i32
  }
  func.func @transform_12(%arg0: i32) -> (i32, i32, i32) {
    %c0_i32 = arith.constant 0 : i32
    %c0_i32_0 = arith.constant 0 : i32
    %c0_i32_1 = arith.constant 0 : i32
    %c0_i32_2 = arith.constant 0 : i32
    return %c0_i32, %c0_i32_0, %c0_i32_1 : i32, i32, i32
  }
  func.func @transform_13(%arg0: i32) -> (i32, i32, i32) {
    %c0_i32 = arith.constant 0 : i32
    %c0_i32_0 = arith.constant 0 : i32
    %c0_i32_1 = arith.constant 0 : i32
    %c0_i32_2 = arith.constant 0 : i32
    return %c0_i32, %c0_i32_0, %c0_i32_1 : i32, i32, i32
  }
  func.func @transform_14(%arg0: i32) -> (i32, i32, i32) {
    %c0_i32 = arith.constant 0 : i32
    %c0_i32_0 = arith.constant 0 : i32
    %c0_i32_1 = arith.constant 0 : i32
    %c0_i32_2 = arith.constant 0 : i32
    return %c0_i32, %c0_i32_0, %c0_i32_1 : i32, i32, i32
  }
  func.func @transform_15(%arg0: i32) -> (i32, i32) {
    %c0_i32 = arith.constant 0 : i32
    %c0_i32_0 = arith.constant 0 : i32
    %c0_i32_1 = arith.constant 0 : i32
    return %c0_i32, %c0_i32_0 : i32, i32
  }
  func.func @transform_16(%arg0: i32) -> (i32, i32) {
    %c0_i32 = arith.constant 0 : i32
    %c0_i32_0 = arith.constant 0 : i32
    %c0_i32_1 = arith.constant 0 : i32
    return %c0_i32, %c0_i32_0 : i32, i32
  }
  func.func @transform_17(%arg0: i32) -> (i32, i32, i32) {
    %c0_i32 = arith.constant 0 : i32
    %c0_i32_0 = arith.constant 0 : i32
    %c0_i32_1 = arith.constant 0 : i32
    return %arg0, %c0_i32, %c0_i32_0 : i32, i32, i32
  }
  func.func @transform_18(%arg0: i32) -> (i32, i32, i32) {
    %c0_i32 = arith.constant 0 : i32
    %c0_i32_0 = arith.constant 0 : i32
    %c0_i32_1 = arith.constant 0 : i32
    return %arg0, %c0_i32, %c0_i32_0 : i32, i32, i32
  }
}

</mosaic_0001>

<bundles_post_ra>
// kernel: tpu_custom_call.1
= control target key start
LH: loop header
LB: loop body
LE: loop exit
PB: predicated region body
PF: predicated region fallthrough
CT: control target
= control target key end

     0   :  { %s3111_s0 = inlined_call_operand.vmem [shape: f32[2,8,16], index: 0, kind: input, shape index: {}]   ;;  %s3112_s1 = inlined_call_operand.vmem [shape: f32[16,32], index: 1, kind: input, shape index: {}]   ;;  %s3113_s2 = inlined_call_operand.hbm [shape: f32[1,32], index: 2, kind: input, shape index: {}]   ;;  %s3114_s3 = inlined_call_operand.vmem [shape: f32[2,32,96], index: 3, kind: input, shape index: {}]   ;;  %s3115_s4 = inlined_call_operand.vmem [shape: f32[2,1,96], index: 4, kind: input, shape index: {}]   ;;  %s3116_s5 = inlined_call_operand.vmem [shape: f32[2,32,32], index: 5, kind: input, shape index: {}]   ;;  %s3117_s6 = inlined_call_operand.vmem [shape: f32[2,1,32], index: 6, kind: input, shape index: {}]   ;;  %s3118_s7 = inlined_call_operand.hbm [shape: f32[2,1,32], index: 7, kind: input, shape index: {}]   ;;  %s3119_s8 = inlined_call_operand.hbm [shape: f32[2,1,32], index: 8, kind: input, shape index: {}]   ;;  %s3120_s9 = inlined_call_operand.vmem [shape: f32[2,32,64], index: 9, kind: input, shape index: {}]   ;;  %s3121_s10 = inlined_call_operand.vmem [shape: f32[2,1,64], index: 10, kind: input, shape index: {}]   ;;  %s3122_s11 = inlined_call_operand.vmem [shape: f32[2,64,32], index: 11, kind: input, shape index: {}]   ;;  %s3123_s12 = inlined_call_operand.vmem [shape: f32[2,1,32], index: 12, kind: input, shape index: {}]   ;;  %s3124_s13 = inlined_call_operand.vmem [shape: f32[2,1,32], index: 13, kind: input, shape index: {}]   ;;  %s3125_s14 = inlined_call_operand.hbm [shape: f32[2,1,32], index: 14, kind: input, shape index: {}]   ;;  %s3126_s15 = inlined_call_operand.vmem [shape: f32[32,2], index: 15, kind: input, shape index: {}]   ;;  %s3127_s16 = inlined_call_operand.vmem [shape: f32[1,2], index: 16, kind: input, shape index: {}]   ;;  %s3128_s17 = inlined_call_operand.hbm [shape: f32[2,1,32], index: 17, kind: output, shape index: {0}]   ;;  %s3129_s18 = inlined_call_operand.hbm [shape: f32[2,1,2], index: 18, kind: output, shape index: {1}]  }
   0x1   :  { %3146 = sst [smem:[#allocation25_spill]] %s3111_s0 }
   0x2   :  { %3147 = sst [smem:[#allocation26_spill]] %s3112_s1 }
   0x3   :  { %3148 = sst [smem:[#allocation27_spill]] %s3113_s2 }
   0x4   :  { %3149 = sst [smem:[#allocation28_spill]] %s3114_s3 }
   0x5   :  { %3150 = sst [smem:[#allocation29_spill]] %s3115_s4 }
   0x6   :  { %3151 = sst [smem:[#allocation30_spill]] %s3118_s7 }
   0x7   :  { %3152 = sst [smem:[#allocation31_spill]] %s3127_s16 }
   0x8   :  { %3153 = sst [smem:[#allocation32_spill]] %s3128_s17 }
   0x9   :  { %3154 = sst [smem:[#allocation33_spill]] %s3129_s18 }
   0xa   :  { %24 = vsyncpa [#allocation3], 0 }
   0xb   :  { %25 = vsyncpa [#allocation6], 0 }
   0xc   :  { %26 = vsyncpa [#allocation9], 0 }
   0xd   :  { %27 = vsyncpa [#allocation4], 0 }
   0xe   :  { %29 = vsyncpa [#allocation4 + $0x1], 0 }
   0xf   :  { %30 = vsyncpa [#allocation12], 0 }
  0x10   :  { %32 = vsyncpa [#allocation12 + $0x1], 0  ;;  %s2646_s27 = smov 0   ;;  %s2648_s28 = smov 0  }
  0x11   :  { %s2650_s29 = smov 0   ;;  %s2652_s30 = smov 0  }
  0x12 LB: > { %3155 = sst [smem:[#allocation18_spill]] %s2518_s27  ;;  %s2667_s0 = sadd.s32 4294967295, %s2530_s30   ;;  %s2530_s30 = sphi %s2652_s30, %s3184_s30   ;;  %s2526_s29 = sphi %s2650_s29, %s3186_s29   ;;  %s2522_s28 = sphi %s2648_s28, %s3188_s28   ;;  %s2518_s27 = sphi %s2646_s27, %s3187_s27  }
  0x13   : > { %3156 = sst [smem:[#allocation19_spill]] %s2526_s29  ;;  %s2063_s19 = sadd.s32 4294967294, %s2530_s30  }
  0x14   : > { %3157 = sst [smem:[#allocation20_spill]] %s2530_s30  ;;  %s2671_s1 = sadd.s32 1, %s2530_s30  }
  0x15   : > { %3158 = sst [smem:[#allocation21_spill]] %s2671_s1  ;;  %s407_s20 = sadd.s32 1, %s2526_s29 }
  0x16   : > { %s404_s21 = ssub.s32 %s2530_s30, %s2671_s1  ;;  %p417_p0 = scmp.ne.s32.totalorder %s2526_s29, %s2522_s28 }
  0x17   : > { %p405_p1 = scmp.eq.s32.totalorder %s404_s21, 0  ;;  %p418_p2 = scmp.eq.s32.totalorder %s2667_s0, 1 }
  0x18   : > { %p423_p3 = scmp.ne.s32.totalorder %s2522_s28, %s2518_s27  ;;  %p424_p4 = scmp.eq.s32.totalorder %s2063_s19, 1 }
  0x19   : > { %s2682_s22 = scalar_select %p405_p1, %s2526_s29, %s407_s20  }
  0x1a   : > { %p2684_p5 = por %p418_p2, %p417_p0  ;;  %p2688_p6 = por %p424_p4, %p423_p3 }
  0x1b   : > { %3159 = sst [smem:[#allocation22_spill]] %s2682_s22  ;;  %p2064_p7 = scmp.ge.s32.totalorder %s2530_s30, 1 }
  0x1c   : > { %s3160_s2 = scalar_select %p2684_p5, 1, 0 }
  0x1d   : > { %s3162_s23 = scalar_select %p2688_p6, 1, 0 }
  0x1e   : > { %3161 = sst [smem:[#allocation23_spill]] %s3160_s2  ;;  %p457_p8 = scmp.lt.s32.totalorder %s2530_s30, 3 }
  0x1f   : > { %3163 = sst [smem:[#allocation24_spill]] %s3162_s23  ;;  %p2183_p9 = scmp.eq.s32.totalorder %s2667_s0, 0 }
  0x20   : > { %p2695_p10 = pnand %p2064_p7, %p457_p8  ;;  %s3165_s7 = sld [smem:[#allocation30_spill]] }
  0x21   : > { %s2532_s20 = smov [#allocation5]   ;;  %s3167_s23 = sld [smem:[#allocation27_spill]] }
  0x22   : > { %p2163_p11 = pneg %p2695_p10  ;;  %s497_s21 = sshll.u32 %s2532_s20, 4  ;;  %s498_s21 = int_to_ptr.vmem [resolvable:$true] %s497_s21 }
  0x23   : > { %s2533_s25 = smov 16   ;;  %s2534_s26 = smov 1  }
  0x24   : > { %p2706_p12 = pnand %p2183_p9, %p2163_p11  ;;  %s2535_s20 = smov [#allocation2]  }
  0x25   : > { %s509_s18 = sshll.u32 %s3119_s8, 4  ;;  %s2536_s17 = smov [#allocation7]   ;;  %s510_s18 = int_to_ptr.hbm [resolvable:$true] %s509_s18 }
  0x26   : > { %s495_s19 = sshll.u32 %s3165_s7, 4  ;;  %s474_s7 = sshll.u32 %s2535_s20, 4  ;;  %s496_s19 = int_to_ptr.hbm [resolvable:$true] %s495_s19  ;;  %s475_s7 = int_to_ptr.vmem [resolvable:$true] %s474_s7 }
  0x27   : > { %s472_s27 = sshll.u32 %s3167_s23, 4  ;;  %s538_s23 = sshll.u32 %s3125_s14, 4  ;;  %s473_s27 = int_to_ptr.hbm [resolvable:$true] %s472_s27  ;;  %s539_s23 = int_to_ptr.hbm [resolvable:$true] %s538_s23 }
  0x28   : > { %2169 = dma.hbm_to_vmem [thread:$0]  (!%p2706_p12), %s496_s19, 32, %s498_s21, [#allocation6], %s2533_s25, %s2533_s25, %s2534_s26  }
  0x29   : > { %2166 = dma.hbm_to_vmem [thread:$0]  (!%p2706_p12), %s473_s27, 16, %s475_s7, [#allocation3]  }
  0x2a   : > { %s511_s2 = sshll.u32 %s2536_s17, 4  ;;  %s2537_s19 = smov [#allocation8]   ;;  %s512_s2 = int_to_ptr.vmem [resolvable:$true] %s511_s2 }
  0x2b   : > { %2172 = dma.hbm_to_vmem [thread:$0]  (!%p2706_p12), %s510_s18, 32, %s512_s2, [#allocation6], %s2533_s25, %s2533_s25, %s2534_s26  }
  0x2c   : > { %s540_s21 = sshll.u32 %s2537_s19, 4  ;;  %569 = sbr.rel (%p2695_p10) target bundleno = 5120 (0x1400), region = 88  ;;  %s541_s21 = int_to_ptr.vmem [resolvable:$true] %s540_s21 }
  0x2d   : > { %2175 = dma.hbm_to_vmem [thread:$0]  (!%p2706_p12), %s539_s23, 32, %s541_s21, [#allocation9], %s2533_s25, %s2533_s25, %s2534_s26  }
  0x31   : > { %2497 = dma.done.wait (%p2183_p9), [#allocation3], 16  }
  0x32   : > { %2499 = vsyncadd (%p2183_p9), [#allocation3], 4294967280 }
  0x33   : > { %2501 = dma.done.wait (%p2183_p9), [#allocation6], 64  }
  0x34   : > { %2503 = vsyncadd (%p2183_p9), [#allocation6], 4294967232 }
  0x35   : > { %2505 = dma.done.wait (%p2183_p9), [#allocation9], 32  }
  0x36   : > { %2507 = vsyncadd (%p2183_p9), [#allocation9], 4294967264  ;;  %p641_p13 = scmp.lt.s32.totalorder %s2667_s0, 1  ;;  %s3168_s27 = sld [smem:[#allocation25_spill]]  ;;  %vm652_vm0 = vcmask 130048   ;;  %vm684_vm1 = vcmask 261120  }
  0x37   : > { %s3169_s24 = sld [smem:[#allocation26_spill]]  ;;  %v2243_v7 = vld [vmem:[#allocation2] ss:$0 sm:$0xff]  ;;  %s3145_s22 = smov 120   ;;  %vm715_vm2 = vcmask 64512  }
  0x38   : > { %s642_s7 = scalar_select %p641_p13, %s2667_s0, 1  ;;  %v708_v49 = vld [vmem:[%s3116_s5] sm:$0xff] }
  0x39   : > { %s3170_s3 = sld [smem:[#allocation28_spill]]  ;;  %s3142_s2 = smov 56  }
  0x3a   : > { %s2075_s16 = sshll.u32 %s642_s7, 3  ;;  %s3171_s4 = sld [smem:[#allocation29_spill]] }
  0x3b   : > { %s2542_s25 = smov 112   ;;  %s2543_s26 = smov 104  }
  0x3c   : > { %s644_s30 = scalar_lea.vmem %s3168_s27, %s2075_s16  ;;  %s2538_s27 = smov 88  }
  0x3d   : > { %v647_v0 = vld [vmem:[%s3169_s24 + $0x8] sm:$0xff]  ;;  %v646_v1 = vld [vmem:[%s3169_s24] sm:$0xff]  ;;  %s2544_s20 = smov 64   ;;  %s2545_s29 = smov 80  }
  0x3e   : > { %670 = vmatpush.msra.mxu0 %v647_v0  ;;  %v645_v2 = vld [vmem:[%s644_s30] sm:$0xff]  ;;  %s2539_s30 = smov 96   ;;  %s3144_s1 = smov 72  }
  0x3f   : > { %v679_v3 = vld [vmem:[%s3170_s3 + $0x18] sm:$0xff]  ;;  %v678_v4 = vld [vmem:[%s3170_s3 + $0x10] sm:$0xff]  ;;  %v677_v5 = vld [vmem:[%s3170_s3 + $0x8] sm:$0xff]  ;;  %s3141_s16 = smov 48   ;;  %s3143_s17 = smov 40  }
  0x40   : > { %671 = vmatpush.msra.mxu0 %v646_v1  ;;  %v676_v6 = vld [vmem:[%s3170_s3] sm:$0xff]  ;;  %s3176_s23 = smov 48  }
  0x41   : > { %2076 = vmatmul.msk.f32.vlgmr.msra.gmra.mxu0 %vm652_vm0, %v645_v2  ;;  %v2244_v10 = vld [vmem:[%s3171_s4] ss:$0 sm:$0xff] }
  0x42   : > { %700 = vmatpush.msrb.mxu0 %v679_v3  ;;  %v709_v3 = vld [vmem:[%s3116_s5 + $0x8] sm:$0xff] }
  0x44   : > { %701 = vmatpush.msrb.mxu0 %v678_v4 }
  0x46   : > { %702 = vmatpush.msrb.mxu0 %v677_v5 }
  0x48   : > { %703 = vmatpush.msrb.mxu0 %v676_v6 }
  0xbe   : > { %v673_v8 = vpop.f32.mrf.mxu0 }
  0xbf   : > { %v2764_v9 = vadd.f32 %v2243_v7, %v673_v8 }
  0xc1   : > { %2077 = vmatmul.msk.f32.vlgmr.msrb.gmra.mxu0 %vm684_vm1, %v2764_v9 }
 0x13e   : > { %v705_v11 = vpop.f32.mrf.mxu0 }
 0x13f   : > { %v2771_v12 = vadd.f32 %v2244_v10, %v705_v11 }
 0x141   : > { %793 = vrot.lane.b32.xlu2 %v2771_v12, %s2538_s27  ;;  %713 = vrot.lane.b32.xlu0 %v2771_v12, %s2539_s30 }
 0x149   : > { %791 = vrot.lane.b32.xlu2 %v2771_v12, %s3145_s22 }
 0x19b   : > { %v794_v34 = vpop.permute.xlu2 %793 }
 0x1a3   : > { %v792_v37 = vpop.permute.xlu2 %791 }
 0x1b3   : > { %v714_v13 = vpop.permute.xlu0 %713 }
 0x1b4   : > { %2078 = vmatpush.xpose.msk.msra.mxu2 %vm715_vm2, %v714_v13 }
 0x1b7   : > { %2079 = vmatmul.msk.f32.vlgmr.msra.gmra.mxu2 %vm715_vm2, %v2771_v12 }
 0x1b8   : > { %888 = vmatpush.msrb.mxu2 %v709_v3 }
 0x23a   : > { %v737_v14 = vpop.f32.mrf.mxu2 }
 0x23b   : > { %v740_v15 = vmul.f32 0.35355338, %v737_v14 }
 0x23d   : > { %v741_v16 = vsel %vm715_vm2, %v740_v15, -inf }
 0x23e   : > { %742 = vmax.xlane.f32.xlu0 %v741_v16 }
 0x252   : > { %844 = vrot.lane.b32.xlu0 %v2771_v12, %s3142_s2  ;;  %s3178_s2 = sld [smem:[#allocation32_spill]] }
 0x25a   : > { %916 = vrot.lane.b32.xlu0 %v2771_v12, %s2542_s25 }
 0x262   : > { %1019 = vrot.lane.b32.xlu0 %v2771_v12, %s2543_s26 }
 0x2b1   : > { %v743_v17 = vpop.xlane.xlu0 %742 }
 0x2b2   : > { %v744_v18 = vsub.f32 %v740_v15, %v743_v17 }
 0x2b4   : > { %v745_v19 = vmul.f32 1.442695, %v744_v18 }
 0x2b6   : > { %2260 = vpow2.f32 %v745_v19 }
 0x2bc   : > { %v2261_v20 = vpop.eup %2260 }
 0x2bd   : > { %v747_v21 = vsel %vm715_vm2, %v2261_v20, 0.0 }
 0x2be   : > { %748 = vadd.xlane.f32.xlu1 %v747_v21 }
 0x2c4   : > { %v845_v22 = vpop.permute.xlu0 %844 }
 0x2c5   : > { %865 = vmatpush.msra.mxu1 %v845_v22 }
 0x2c7   : > { %911 = vmatpush.msrb.mxu1 %v708_v49 }
 0x2cc   : > { %v917_v47 = vpop.permute.xlu0 %916 }
 0x2d4   : > { %v1020_v2 = vpop.permute.xlu0 %1019 }
 0x2d7   : > { %765 = vrot.lane.b32.xlu1 %v2771_v12, %s2544_s20 }
 0x331   : > { %v749_v23 = vpop.xlane.xlu1 %748 }
 0x332   : > { %2262 = vrcp.f32 %v749_v23  ;;  %v761_v29 = vand.u32 2147483648, %v749_v23  ;;  %vm755_vm4 = vweird.f32 %v749_v23  ;;  %v759_v30 = vand.u32 2147483647, %v749_v23 }
 0x334   : > { %v762_v32 = vor.u32 1.1754944e-38, %v761_v29  ;;  %vm760_vm6 = vcmp.eq.f32.partialorder %v759_v30, 8.507059e+37 }
 0x338   : > { %v2263_v24 = vpop.eup %2262 }
 0x339   : > { %v751_v25 = vmul.f32 %v2263_v24, %v749_v23  ;;  %vm756_vm3 = vweird.f32 %v2263_v24 }
 0x33a   : > { %vm757_vm5 = vmor %vm755_vm4, %vm756_vm3 }
 0x33b   : > { %v752_v26 = vsub.f32 1.0, %v751_v25 }
 0x33d   : > { %v753_v27 = vmul.f32 %v2263_v24, %v752_v26 }
 0x33f   : > { %v754_v28 = vadd.f32 %v2263_v24, %v753_v27 }
 0x341   : > { %v758_v31 = vsel %vm757_vm5, %v2263_v24, %v754_v28 }
 0x342   : > { %v763_v33 = vsel %vm760_vm6, %v762_v32, %v758_v31 }
 0x343   : > { %v764_v36 = vmul.f32 %v2261_v20, %v763_v33 }
 0x349   : > { %v766_v35 = vpop.permute.xlu1 %765 }
 0x34a   : > { %786 = vmatpush.msra.mxu3 %v766_v35 }
 0x34b   : > { %2080 = vmatmul.msk.f32.vlgmr.msra.gmra.mxu3 %vm715_vm2, %v764_v36 }
 0x34c   : > { %2081 = vmatpush.xpose.msk.msrb.mxu3 %vm715_vm2, %v794_v34  ;;  %v710_v34 = vld [vmem:[%s3116_s5 + $0x10] sm:$0xff] }
 0x34d   : > { %1013 = vmatpush.msra.mxu2 %v710_v34  ;;  %v1200_v34 = vld [vmem:[%s3122_s11 + $0x8] sm:$0xff] }
 0x353   : > { %2082 = vmatmul.msk.f32.vlgmr.msrb.gmra.mxu3 %vm715_vm2, %v792_v37 }
 0x3ce   : > { %v788_v38 = vpop.f32.mrf.mxu3 }
 0x3d6   : > { %v816_v39 = vpop.f32.mrf.mxu3 }
 0x3d7   : > { %v819_v40 = vmul.f32 0.35355338, %v816_v39 }
 0x3d9   : > { %v820_v41 = vsel %vm715_vm2, %v819_v40, -inf }
 0x3da   : > { %821 = vmax.xlane.f32.xlu2 %v820_v41 }
 0x3f2   : > { %918 = vrot.lane.b32.xlu2 %v2771_v12, %s2545_s29 }
 0x44d   : > { %v822_v42 = vpop.xlane.xlu2 %821 }
 0x44e   : > { %v823_v43 = vsub.f32 %v819_v40, %v822_v42 }
 0x450   : > { %v824_v44 = vmul.f32 1.442695, %v823_v43 }
 0x452   : > { %2264 = vpow2.f32 %v824_v44 }
 0x455   : > { %v919_v45 = vpop.permute.xlu2 %918 }
 0x456   : > { %2086 = vmatpush.xpose.msk.msra.mxu3 %vm715_vm2, %v919_v45 }
 0x458   : > { %v2265_v46 = vpop.eup %2264 }
 0x459   : > { %2087 = vmatmul.msk.f32.vlgmr.msra.gmra.mxu3 %vm715_vm2, %v917_v47  ;;  %v826_v48 = vsel %vm715_vm2, %v2265_v46, 0.0 }
 0x45a   : > { %827 = vadd.xlane.f32.xlu1 %v826_v48  ;;  %v711_v48 = vld [vmem:[%s3116_s5 + $0x18] sm:$0xff] }
 0x473   : > { %1021 = vrot.lane.b32.xlu1 %v2771_v12, %s3144_s1 }
 0x4cd   : > { %v828_v50 = vpop.xlane.xlu1 %827 }
 0x4ce   : > { %2266 = vrcp.f32 %v828_v50  ;;  %v840_v54 = vand.u32 2147483648, %v828_v50  ;;  %v838_v56 = vand.u32 2147483647, %v828_v50  ;;  %vm834_vm8 = vweird.f32 %v828_v50 }
 0x4d0   : > { %v841_v58 = vor.u32 1.1754944e-38, %v840_v54  ;;  %vm839_vm10 = vcmp.eq.f32.partialorder %v838_v56, 8.507059e+37  ;;  %v2245_v54 = vld [vmem:[%s3117_s6] ss:$0 sm:$0xff] }
 0x4d4   : > { %v2267_v51 = vpop.eup %2266 }
 0x4d5   : > { %v830_v52 = vmul.f32 %v2267_v51, %v828_v50  ;;  %vm835_vm7 = vweird.f32 %v2267_v51 }
 0x4d6   : > { %vm836_vm9 = vmor %vm834_vm8, %vm835_vm7 }
 0x4d7   : > { %v831_v53 = vsub.f32 1.0, %v830_v52 }
 0x4d9   : > { %v832_v55 = vmul.f32 %v2267_v51, %v831_v53 }
 0x4db   : > { %v833_v57 = vadd.f32 %v2267_v51, %v832_v55 }
 0x4dc   : > { %v941_v59 = vpop.f32.mrf.mxu3 }
 0x4dd   : > { %v944_v60 = vmul.f32 0.35355338, %v941_v59  ;;  %v837_v61 = vsel %vm836_vm9, %v2267_v51, %v833_v57  ;;  %vm1211_vm9 = vcmask 523264  }
 0x4de   : > { %v842_v62 = vsel %vm839_vm10, %v841_v58, %v837_v61 }
 0x4df   : > { %v945_v63 = vsel %vm715_vm2, %v944_v60, -inf  ;;  %v843_v0 = vmul.f32 %v2265_v46, %v842_v62 }
 0x4e0   : > { %946 = vmax.xlane.f32.xlu2 %v945_v63 }
 0x4e1   : > { %2083 = vmatmul.msk.f32.vlgmr.msra.gmra.mxu1 %vm715_vm2, %v843_v0 }
 0x4e5   : > { %v1022_v1 = vpop.permute.xlu1 %1021 }
 0x4e6   : > { %2090 = vmatpush.xpose.msk.msra.mxu1 %vm715_vm2, %v1022_v1 }
 0x4e9   : > { %2085 = vmatmul.msk.f32.vlgmr.msrb.gmra.mxu1 %vm715_vm2, %v788_v38 }
 0x4f1   : > { %2091 = vmatmul.msk.f32.vlgmr.msra.gmra.mxu1 %vm715_vm2, %v1020_v2 }
 0x553   : > { %v947_v4 = vpop.xlane.xlu2 %946 }
 0x554   : > { %v948_v5 = vsub.f32 %v944_v60, %v947_v4  ;;  %v2549_v60 = vmov 32.0  }
 0x556   : > { %v949_v6 = vmul.f32 1.442695, %v948_v5 }
 0x558   : > { %2268 = vpow2.f32 %v949_v6 }
 0x55e   : > { %v2269_v7 = vpop.eup %2268  ;;  %v867_v8 = vpop.f32.mrf.mxu1 }
 0x55f   : > { %2084 = vmatmul.msk.f32.vlgmr.msrb.gmra.mxu2 %vm715_vm2, %v867_v8  ;;  %v951_v10 = vsel %vm715_vm2, %v2269_v7, 0.0  ;;  %v1169_v8 = vld [vmem:[%s3120_s9 + $0x10] sm:$0xff] }
 0x560   : > { %952 = vadd.xlane.f32.xlu1 %v951_v10  ;;  %v1168_v10 = vld [vmem:[%s3120_s9 + $0x8] sm:$0xff] }
 0x566   : > { %v2816_v11 = vpop.f32.mrf.mxu1 }
 0x56e   : > { %v1044_v13 = vpop.f32.mrf.mxu1 }
 0x56f   : > { %v1047_v14 = vmul.f32 0.35355338, %v1044_v13  ;;  %v1206_v13 = vld [vmem:[%s3122_s11 + $0x38] sm:$0xff] }
 0x570   : > { %1223 = vmatpush.msrb.mxu1 %v1206_v13 }
 0x571   : > { %v1048_v15 = vsel %vm715_vm2, %v1047_v14, -inf }
 0x572   : > { %1049 = vmax.xlane.f32.xlu0 %v1048_v15  ;;  %v1204_v15 = vld [vmem:[%s3122_s11 + $0x28] sm:$0xff] }
 0x586   : > { %969 = vrot.lane.b32.xlu0 %v2771_v12, %s3141_s16  ;;  %s1922_s16 = scalar_lea.hbm %s3178_s2, %s2667_s0 }
 0x587   : > { %s1926_s1 = sshll.u32 %s1922_s16, 4  ;;  %s1927_s1 = int_to_ptr.hbm [resolvable:$true] %s1926_s1 }
 0x588   : > { %s2438_s18 = sshra.s32 %s1927_s1, 4  ;;  %s2439_s18 = int_to_ptr.hbm [resolvable:$true] %s2438_s18 }
 0x589   : > { %p2445_p3 = scmp.lt.s32.totalorder %s2439_s18, %s3178_s2 }
 0x5d3   : > { %v953_v16 = vpop.xlane.xlu1 %952 }
 0x5d4   : > { %2270 = vrcp.f32 %v953_v16  ;;  %v965_v25 = vand.u32 2147483648, %v953_v16  ;;  %vm959_vm12 = vweird.f32 %v953_v16  ;;  %v963_v27 = vand.u32 2147483647, %v953_v16 }
 0x5d6   : > { %v966_v30 = vor.u32 1.1754944e-38, %v965_v25  ;;  %vm964_vm14 = vcmp.eq.f32.partialorder %v963_v27, 8.507059e+37  ;;  %v2246_v27 = vld [vmem:[#allocation5] ss:$0 sm:$0xff] }
 0x5da   : > { %v2271_v17 = vpop.eup %2270 }
 0x5db   : > { %v955_v18 = vmul.f32 %v2271_v17, %v953_v16  ;;  %vm960_vm11 = vweird.f32 %v2271_v17 }
 0x5dc   : > { %vm961_vm13 = vmor %vm959_vm12, %vm960_vm11 }
 0x5dd   : > { %v956_v20 = vsub.f32 1.0, %v955_v18  ;;  %v1203_v18 = vld [vmem:[%s3122_s11 + $0x20] sm:$0xff] }
 0x5df   : > { %v957_v23 = vmul.f32 %v2271_v17, %v956_v20  ;;  %v1202_v20 = vld [vmem:[%s3122_s11 + $0x18] sm:$0xff] }
 0x5e1   : > { %v958_v24 = vadd.f32 %v2271_v17, %v957_v23 }
 0x5e2   : > { %v890_v50 = vpop.f32.mrf.mxu2 }
 0x5e3   : > { %v962_v29 = vsel %vm961_vm13, %v2271_v17, %v958_v24  ;;  %v914_v52 = vadd.f32 %v2816_v11, %v890_v50  ;;  %v1167_v11 = vld [vmem:[%s3120_s9] sm:$0xff]  ;;  %v2098_v50 = vld [vmem:[%s3170_s3 + $0x30] sm:$0xff] }
 0x5e4   : > { %v967_v31 = vsel %vm964_vm14, %v966_v30, %v962_v29  ;;  %v2247_v30 = vld [vmem:[#allocation7] ss:$0 sm:$0xff] }
 0x5e5   : > { %v1050_v19 = vpop.xlane.xlu0 %1049  ;;  %v968_v33 = vmul.f32 %v2269_v7, %v967_v31  ;;  %v1170_v7 = vld [vmem:[%s3120_s9 + $0x18] sm:$0xff] }
 0x5e6   : > { %v1051_v21 = vsub.f32 %v1047_v14, %v1050_v19  ;;  %1190 = vmatpush.msrb.mxu2 %v1170_v7  ;;  %v1205_v14 = vld [vmem:[%s3122_s11 + $0x30] sm:$0xff] }
 0x5e7   : > { %1224 = vmatpush.msrb.mxu1 %v1205_v14 }
 0x5e8   : > { %v1052_v22 = vmul.f32 1.442695, %v1051_v21  ;;  %1191 = vmatpush.msrb.mxu2 %v1169_v8 }
 0x5e9   : > { %1225 = vmatpush.msrb.mxu1 %v1204_v15 }
 0x5ea   : > { %2272 = vpow2.f32 %v1052_v22  ;;  %1192 = vmatpush.msrb.mxu2 %v1168_v10 }
 0x5eb   : > { %1226 = vmatpush.msrb.mxu1 %v1203_v18 }
 0x5ec   : > { %1193 = vmatpush.msrb.mxu2 %v1167_v11 }
 0x5ed   : > { %1227 = vmatpush.msrb.mxu1 %v1202_v20 }
 0x5f0   : > { %v2273_v26 = vpop.eup %2272 }
 0x5f1   : > { %v1054_v28 = vsel %vm715_vm2, %v2273_v26, 0.0 }
 0x5f2   : > { %1055 = vadd.xlane.f32.xlu2 %v1054_v28 }
 0x5f8   : > { %v970_v32 = vpop.permute.xlu0 %969 }
 0x5f9   : > { %990 = vmatpush.msra.mxu0 %v970_v32 }
 0x5fa   : > { %2088 = vmatmul.msk.f32.vlgmr.msra.gmra.mxu0 %vm715_vm2, %v968_v33  ;;  %v1201_v33 = vld [vmem:[%s3122_s11 + $0x10] sm:$0xff] }
 0x5fb   : > { %1116 = vmatpush.msrb.mxu0 %v711_v48  ;;  %1228 = vmatpush.msrb.mxu1 %v1201_v33 }
 0x5fd   : > { %1229 = vmatpush.msrb.mxu1 %v1200_v34 }
 0x60a   : > { %1072 = vrot.lane.b32.xlu2 %v2771_v12, %s3143_s17 }
 0x665   : > { %v1056_v35 = vpop.xlane.xlu2 %1055 }
 0x666   : > { %2274 = vrcp.f32 %v1056_v35  ;;  %v1068_v40 = vand.u32 2147483648, %v1056_v35  ;;  %v1066_v42 = vand.u32 2147483647, %v1056_v35  ;;  %vm1062_vm0 = vweird.f32 %v1056_v35 }
 0x667   : > { %2276 = vrcp.f32 %v2549_v60 }
 0x668   : > { %v1069_v12 = vor.u32 1.1754944e-38, %v1068_v40  ;;  %vm1067_vm4 = vcmp.eq.f32.partialorder %v1066_v42, 8.507059e+37  ;;  %v2249_v40 = vld [vmem:[%s3123_s12] ss:$0 sm:$0xff] }
 0x66c   : > { %v2275_v36 = vpop.eup %2274 }
 0x66d   : > { %v1058_v37 = vmul.f32 %v2275_v36, %v1056_v35  ;;  %v1073_v38 = vpop.permute.xlu2 %1072  ;;  %vm1063_vm15 = vweird.f32 %v2275_v36  ;;  %v2277_v61 = vpop.eup %2276  ;;  %v1199_v35 = vld [vmem:[%s3122_s11] sm:$0xff] }
 0x66e   : > { %1093 = vmatpush.msrb.mxu3 %v1073_v38  ;;  %vm1064_vm3 = vmor %vm1062_vm0, %vm1063_vm15  ;;  %v1134_v62 = vmul.f32 32.0, %v2277_v61  ;;  %vm1138_vm5 = vweird.f32 %v2277_v61  ;;  %1230 = vmatpush.msrb.mxu1 %v1199_v35 }
 0x66f   : > { %v1059_v39 = vsub.f32 1.0, %v1058_v37 }
 0x670   : > { %v1135_v63 = vsub.f32 1.0, %v1134_v62  ;;  %v2250_v62 = vld [vmem:[%s3124_s13] ss:$0 sm:$0xff] }
 0x671   : > { %v1060_v41 = vmul.f32 %v2275_v36, %v1059_v39 }
 0x672   : > { %v1136_v0 = vmul.f32 %v2277_v61, %v1135_v63 }
 0x673   : > { %v1061_v43 = vadd.f32 %v2275_v36, %v1060_v41 }
 0x674   : > { %v1137_v1 = vadd.f32 %v2277_v61, %v1136_v0 }
 0x675   : > { %v1065_v44 = vsel %vm1064_vm3, %v2275_v36, %v1061_v43  ;;  %v2248_v36 = vld [vmem:[%s3121_s10] ss:$0 sm:$0xff] }
 0x676   : > { %v1070_v45 = vsel %vm1067_vm4, %v1069_v12, %v1065_v44  ;;  %v2840_v2 = vsel %vm1138_vm5, %v2277_v61, %v1137_v1  ;;  %v2251_v1 = vld [vmem:[#allocation8] ss:$0 sm:$0xff] }
 0x677   : > { %v992_v46 = vpop.f32.mrf.mxu0  ;;  %v1071_v47 = vmul.f32 %v2273_v26, %v1070_v45 }
 0x678   : > { %2089 = vmatmul.msk.f32.vlgmr.msra.gmra.mxu2 %vm715_vm2, %v992_v46 }
 0x679   : > { %2092 = vmatmul.msk.f32.vlgmr.msrb.gmra.mxu3 %vm715_vm2, %v1071_v47 }
 0x6fb   : > { %v1015_v51 = vpop.f32.mrf.mxu2 }
 0x6fc   : > { %v1095_v49 = vpop.f32.mrf.mxu3  ;;  %v1018_v53 = vadd.f32 %v1015_v51, %v914_v52  ;;  %v2097_v51 = vld [vmem:[%s3170_s3 + $0x28] sm:$0xff]  ;;  %v2096_v52 = vld [vmem:[%s3170_s3 + $0x20] sm:$0xff] }
 0x6fd   : > { %2093 = vmatmul.msk.f32.vlgmr.msrb.gmra.mxu0 %vm715_vm2, %v1095_v49  ;;  %v2099_v49 = vld [vmem:[%s3170_s3 + $0x38] sm:$0xff] }
 0x6fe   : > { %1293 = vmatpush.msra.mxu3 %v2099_v49 }
 0x700   : > { %1294 = vmatpush.msra.mxu3 %v2098_v50 }
 0x702   : > { %1295 = vmatpush.msra.mxu3 %v2097_v51 }
 0x704   : > { %1296 = vmatpush.msra.mxu3 %v2096_v52 }
 0x77a   : > { %v1118_v55 = vpop.f32.mrf.mxu0 }
 0x77b   : > { %v1121_v56 = vadd.f32 %v1118_v55, %v1018_v53 }
 0x77d   : > { %v1126_v57 = vadd.f32 %v2245_v54, %v1121_v56 }
 0x77f   : > { %v1127_v58 = vadd.f32 %v1126_v57, %v2764_v9 }
 0x781   : > { %v1130_v59 = vsel %vm684_vm1, %v1127_v58, 0.0 }
 0x782   : > { %1131 = vadd.xlane.f32.xlu1 %v1130_v59 }
 0x7f5   : > { %v1132_v3 = vpop.xlane.xlu1 %1131 }
 0x7f6   : > { %v1140_v4 = vmul.f32 %v2840_v2, %v1132_v3 }
 0x7f8   : > { %v1141_v5 = vsub.f32 %v1127_v58, %v1140_v4 }
 0x7fa   : > { %v1142_v6 = vmul.f32 %v1141_v5, %v1141_v5 }
 0x7fc   : > { %v1143_v9 = vsel %vm684_vm1, %v1142_v6, 0.0 }
 0x7fd   : > { %1144 = vadd.xlane.f32.xlu0 %v1143_v9 }
 0x870   : > { %v1145_v16 = vpop.xlane.xlu0 %1144 }
 0x871   : > { %v1146_v17 = vmul.f32 %v1145_v16, %v2840_v2 }
 0x873   : > { %v1147_v19 = vadd.f32 1e-05, %v1146_v17 }
 0x875   : > { %2278 = vrsqrt.f32 %v1147_v19  ;;  %vm1154_vm7 = vweird.f32 %v1147_v19 }
 0x87b   : > { %v2279_v21 = vpop.eup %2278 }
 0x87c   : > { %v1149_v22 = vmul.f32 %v2279_v21, %v1147_v19  ;;  %vm1155_vm6 = vweird.f32 %v2279_v21  ;;  %v2102_v19 = vld [vmem:[%s3116_s5 + $0x20] sm:$0xff] }
 0x87d   : > { %vm1156_vm8 = vmor %vm1154_vm7, %vm1155_vm6  ;;  %1504 = vmatpush.msra.mxu1 %v2102_v19 }
 0x87e   : > { %v1150_v23 = vmul.f32 %v2279_v21, %v1149_v22 }
 0x880   : > { %v1151_v24 = vmul.f32 0.5, %v1150_v23 }
 0x882   : > { %v1152_v25 = vsub.f32 1.5, %v1151_v24 }
 0x884   : > { %v1153_v26 = vmul.f32 %v2279_v21, %v1152_v25 }
 0x886   : > { %v1157_v28 = vsel %vm1156_vm8, %v2279_v21, %v1153_v26 }
 0x887   : > { %v1158_v29 = vmul.f32 %v1157_v28, %v1141_v5  ;;  %v2252_v5 = vld [vmem:[%s3171_s4 + $0x1] ss:$0 sm:$0xff] }
 0x889   : > { %v1162_v31 = vmul.f32 %v2246_v27, %v1158_v29 }
 0x88b   : > { %v1166_v32 = vadd.f32 %v2247_v30, %v1162_v31 }
 0x88d   : > { %2094 = vmatmul.msk.f32.vlgmr.msrb.gmra.mxu2 %vm684_vm1, %v1166_v32 }
 0x910   : > { %v1195_v37 = vpop.f32.mrf.mxu2 }
 0x911   : > { %v1196_v38 = vadd.f32 %v2248_v36, %v1195_v37 }
 0x913   : > { %v1198_v39 = vmax.f32 %v1196_v38, 0.0 }
 0x915   : > { %2095 = vmatmul.msk.f32.vlgmr.msrb.gmra.mxu1 %vm1211_vm9, %v1198_v39 }
 0x992   : > { %v1232_v41 = vpop.f32.mrf.mxu1 }
 0x993   : > { %v1233_v42 = vadd.f32 %v2249_v40, %v1232_v41 }
 0x995   : > { %v1235_v43 = vadd.f32 %v1233_v42, %v1166_v32 }
 0x997   : > { %v1238_v12 = vsel %vm684_vm1, %v1235_v43, 0.0 }
 0x998   : > { %1239 = vadd.xlane.f32.xlu1 %v1238_v12 }
 0xa0b   : > { %v1240_v44 = vpop.xlane.xlu1 %1239 }
 0xa0c   : > { %v1241_v45 = vmul.f32 %v1240_v44, %v2840_v2 }
 0xa0e   : > { %v1242_v46 = vsub.f32 %v1235_v43, %v1241_v45 }
 0xa10   : > { %v1243_v47 = vmul.f32 %v1242_v46, %v1242_v46 }
 0xa12   : > { %v1244_v48 = vsel %vm684_vm1, %v1243_v47, 0.0 }
 0xa13   : > { %1245 = vadd.xlane.f32.xlu2 %v1244_v48 }
 0xa86   : > { %v1246_v53 = vpop.xlane.xlu2 %1245 }
 0xa87   : > { %v1247_v54 = vmul.f32 %v1246_v53, %v2840_v2 }
 0xa89   : > { %v1248_v55 = vadd.f32 1e-05, %v1247_v54 }
 0xa8b   : > { %2280 = vrsqrt.f32 %v1248_v55  ;;  %vm1255_vm11 = vweird.f32 %v1248_v55 }
 0xa91   : > { %v2281_v56 = vpop.eup %2280 }
 0xa92   : > { %v1250_v57 = vmul.f32 %v2281_v56, %v1248_v55  ;;  %vm1256_vm10 = vweird.f32 %v2281_v56 }
 0xa93   : > { %vm1257_vm12 = vmor %vm1255_vm11, %vm1256_vm10 }
 0xa94   : > { %v1251_v58 = vmul.f32 %v2281_v56, %v1250_v57 }
 0xa96   : > { %v1252_v59 = vmul.f32 0.5, %v1251_v58 }
 0xa98   : > { %v1253_v60 = vsub.f32 1.5, %v1252_v59 }
 0xa9a   : > { %v1254_v61 = vmul.f32 %v2281_v56, %v1253_v60 }
 0xa9c   : > { %v1258_v63 = vsel %vm1257_vm12, %v2281_v56, %v1254_v61 }
 0xa9d   : > { %v1259_v0 = vmul.f32 %v1258_v63, %v1242_v46 }
 0xa9f   : > { %v1263_v3 = vmul.f32 %v2250_v62, %v1259_v0 }
 0xaa1   : > { %v2908_v4 = vadd.f32 %v2251_v1, %v1263_v3 }
 0xaa3   : > { %2101 = vmatmul.msk.f32.vlgmr.msra.gmra.mxu3 %vm684_vm1, %v2908_v4 }
 0xb26   : > { %v1298_v6 = vpop.f32.mrf.mxu3 }
 0xb27   : > { %v2915_v9 = vadd.f32 %v2252_v5, %v1298_v6 }
 0xb29   : > { %1358 = vrot.lane.b32.xlu2 %v2915_v9, %s2544_s20  ;;  %1307 = vrot.lane.b32.xlu1 %v2915_v9, %s2539_s30  ;;  %s3172_s30 = smov 120  }
 0xb31   : > { %1511 = vrot.lane.b32.xlu2 %v2915_v9, %s2545_s29  ;;  %s2444_s29 = scalar_lea.hbm %s3178_s2, 2 }
 0xb39   : > { %1612 = vrot.lane.b32.xlu2 %v2915_v9, %s2543_s26  ;;  %s3173_s26 = smov 72  }
 0xb83   : > { %v1359_v7 = vpop.permute.xlu2 %1358 }
 0xb84   : > { %1379 = vmatpush.msra.mxu2 %v1359_v7 }
 0xb8b   : > { %v1512_v33 = vpop.permute.xlu2 %1511 }
 0xb93   : > { %v1613_v38 = vpop.permute.xlu2 %1612 }
 0xb9b   : > { %v1308_v8 = vpop.permute.xlu1 %1307 }
 0xb9c   : > { %2106 = vmatpush.xpose.msk.msra.mxu0 %vm715_vm2, %v1308_v8 }
 0xb9f   : > { %2107 = vmatmul.msk.f32.vlgmr.msra.gmra.mxu0 %vm715_vm2, %v2915_v9 }
 0xc1c   : > { %v1330_v10 = vpop.f32.mrf.mxu0 }
 0xc1d   : > { %v1333_v11 = vmul.f32 0.35355338, %v1330_v10 }
 0xc1f   : > { %v1334_v13 = vsel %vm715_vm2, %v1333_v11, -inf }
 0xc20   : > { %1335 = vmax.xlane.f32.xlu1 %v1334_v13 }
 0xc39   : > { %1509 = vrot.lane.b32.xlu1 %v2915_v9, %s2542_s25  ;;  %s3175_s25 = smov 56  }
 0xc93   : > { %v1336_v14 = vpop.xlane.xlu1 %1335 }
 0xc94   : > { %v1337_v15 = vsub.f32 %v1333_v11, %v1336_v14 }
 0xc96   : > { %v1338_v16 = vmul.f32 1.442695, %v1337_v15 }
 0xc98   : > { %2282 = vpow2.f32 %v1338_v16 }
 0xc9e   : > { %v2283_v17 = vpop.eup %2282 }
 0xc9f   : > { %v1340_v18 = vsel %vm715_vm2, %v2283_v17, 0.0 }
 0xca0   : > { %1341 = vadd.xlane.f32.xlu0 %v1340_v18  ;;  %v2103_v18 = vld [vmem:[%s3116_s5 + $0x28] sm:$0xff] }
 0xca1   : > { %1481 = vmatpush.msrb.mxu2 %v2103_v18  ;;  %v2254_v18 = vld [vmem:[#allocation5 + $0x1] ss:$0 sm:$0xff] }
 0xcab   : > { %v1510_v35 = vpop.permute.xlu1 %1509 }
 0xcb4   : > { %1386 = vrot.lane.b32.xlu0 %v2915_v9, %s2538_s27  ;;  %s3174_s27 = smov 40  }
 0xcbc   : > { %1384 = vrot.lane.b32.xlu0 %v2915_v9, %s3172_s30  ;;  %s2440_s30 = scalar_lea.hbm %s2439_s18, 1 }
 0xcbd   : > { %p2441_p0 = scmp.ne.s32.totalorder %s2439_s18, %s2440_s30  ;;  %p2446_p4 = scmp.lt.s32.totalorder %s2444_s29, %s2440_s30 }
 0xcbf   : > { %p2442_p1 = pnand %p2441_p0, %p2684_p5  ;;  %p2447_p7 = por %p2446_p4, %p2445_p3 }
 0xcc1   : > { %p2443_p2 = pneg %p2442_p1 }
 0xcc3   : > { %p2448_p8 = pnand %p2447_p7, %p2443_p2 }
 0xcc4   : > { %1614 = vrot.lane.b32.xlu0 %v2915_v9, %s3173_s26 }
 0xd13   : > { %v1342_v20 = vpop.xlane.xlu0 %1341 }
 0xd14   : > { %2284 = vrcp.f32 %v1342_v20  ;;  %v1354_v24 = vand.u32 2147483648, %v1342_v20  ;;  %v1352_v26 = vand.u32 2147483647, %v1342_v20  ;;  %vm1348_vm14 = vweird.f32 %v1342_v20 }
 0xd16   : > { %v1355_v28 = vor.u32 1.1754944e-38, %v1354_v24  ;;  %vm1353_vm0 = vcmp.eq.f32.partialorder %v1352_v26, 8.507059e+37 }
 0xd1a   : > { %v2285_v21 = vpop.eup %2284 }
 0xd1b   : > { %v1344_v22 = vmul.f32 %v2285_v21, %v1342_v20  ;;  %vm1349_vm13 = vweird.f32 %v2285_v21 }
 0xd1c   : > { %vm1350_vm15 = vmor %vm1348_vm14, %vm1349_vm13 }
 0xd1d   : > { %v1345_v23 = vsub.f32 1.0, %v1344_v22 }
 0xd1f   : > { %v1346_v25 = vmul.f32 %v2285_v21, %v1345_v23 }
 0xd21   : > { %v1347_v27 = vadd.f32 %v2285_v21, %v1346_v25 }
 0xd23   : > { %v1351_v29 = vsel %vm1350_vm15, %v2285_v21, %v1347_v27 }
 0xd24   : > { %v1356_v30 = vsel %vm1353_vm0, %v1355_v28, %v1351_v29 }
 0xd25   : > { %v1357_v31 = vmul.f32 %v2283_v17, %v1356_v30 }
 0xd26   : > { %v1387_v32 = vpop.permute.xlu0 %1386 }
 0xd27   : > { %2108 = vmatmul.msk.f32.vlgmr.msra.gmra.mxu2 %vm715_vm2, %v1357_v31  ;;  %2109 = vmatpush.xpose.msk.msrb.mxu3 %vm715_vm2, %v1387_v32 }
 0xd2b   : > { %2114 = vmatpush.xpose.msk.msra.mxu3 %vm715_vm2, %v1512_v33 }
 0xd2e   : > { %v1385_v34 = vpop.permute.xlu0 %1384 }
 0xd2f   : > { %2110 = vmatmul.msk.f32.vlgmr.msrb.gmra.mxu3 %vm715_vm2, %v1385_v34 }
 0xd36   : > { %v1615_v36 = vpop.permute.xlu0 %1614 }
 0xd37   : > { %2115 = vmatmul.msk.f32.vlgmr.msra.gmra.mxu3 %vm715_vm2, %v1510_v35  ;;  %2118 = vmatpush.xpose.msk.msrb.mxu1 %vm715_vm2, %v1615_v36 }
 0xdaa   : > { %v1381_v37 = vpop.f32.mrf.mxu2 }
 0xdab   : > { %2113 = vmatmul.msk.f32.vlgmr.msra.gmra.mxu1 %vm715_vm2, %v1381_v37 }
 0xdb2   : > { %v1409_v39 = vpop.f32.mrf.mxu3 }
 0xdb3   : > { %v1412_v40 = vmul.f32 0.35355338, %v1409_v39  ;;  %2119 = vmatmul.msk.f32.vlgmr.msrb.gmra.mxu1 %vm715_vm2, %v1613_v38 }
 0xdb5   : > { %v1413_v41 = vsel %vm715_vm2, %v1412_v40, -inf }
 0xdb6   : > { %1414 = vmax.xlane.f32.xlu0 %v1413_v41 }
 0xdba   : > { %v1534_v42 = vpop.f32.mrf.mxu3 }
 0xdbb   : > { %v1537_v43 = vmul.f32 0.35355338, %v1534_v42 }
 0xdbd   : > { %v1538_v12 = vsel %vm715_vm2, %v1537_v43, -inf }
 0xdbe   : > { %1539 = vmax.xlane.f32.xlu2 %v1538_v12  ;;  %v2105_v12 = vld [vmem:[%s3116_s5 + $0x38] sm:$0xff] }
 0xe28   : > { %v2951_v44 = vpop.f32.mrf.mxu1 }
 0xe29   : > { %v1415_v45 = vpop.xlane.xlu0 %1414 }
 0xe2a   : > { %v1416_v46 = vsub.f32 %v1412_v40, %v1415_v45 }
 0xe2c   : > { %v1417_v47 = vmul.f32 1.442695, %v1416_v46 }
 0xe2e   : > { %2286 = vpow2.f32 %v1417_v47 }
 0xe30   : > { %v1637_v48 = vpop.f32.mrf.mxu1 }
 0xe31   : > { %v1640_v49 = vmul.f32 0.35355338, %v1637_v48  ;;  %v1540_v50 = vpop.xlane.xlu2 %1539 }
 0xe32   : > { %v1541_v51 = vsub.f32 %v1537_v43, %v1540_v50  ;;  %v2104_v43 = vld [vmem:[%s3116_s5 + $0x30] sm:$0xff] }
 0xe33   : > { %v1641_v52 = vsel %vm715_vm2, %v1640_v49, -inf  ;;  %1606 = vmatpush.msra.mxu2 %v2104_v43 }
 0xe34   : > { %v2287_v53 = vpop.eup %2286  ;;  %v1542_v54 = vmul.f32 1.442695, %v1541_v51  ;;  %1642 = vmax.xlane.f32.xlu1 %v1641_v52  ;;  %v2253_v51 = vld [vmem:[%s3117_s6 + $0x1] ss:$0 sm:$0xff] }
 0xe35   : > { %v1419_v55 = vsel %vm715_vm2, %v2287_v53, 0.0 }
 0xe36   : > { %2288 = vpow2.f32 %v1542_v54  ;;  %1420 = vadd.xlane.f32.xlu0 %v1419_v55 }
 0xe3c   : > { %v2955_v56 = vpop.eup %2288 }
 0xe3d   : > { %v1544_v57 = vsel %vm715_vm2, %v2955_v56, 0.0 }
 0xe3e   : > { %1545 = vadd.xlane.f32.xlu2 %v1544_v57 }
 0xe4d   : > { %1665 = vrot.lane.b32.xlu1 %v2915_v9, %s3174_s27 }
 0xe56   : > { %1437 = vrot.lane.b32.xlu2 %v2915_v9, %s3175_s25  ;;  %s3056_s25 = sand.u32 1, %s2522_s28  }
 0xe57   : > { %s634_s19 = scalar_lea.vmem [#allocation10], %s3056_s25  ;;  %s1910_s17 = scalar_lea.sflag [#allocation4], %s3056_s25 }
 0xe58   : > { %s1924_s22 = sshll.u32 %s634_s19, 4  ;;  %s1925_s22 = int_to_ptr.vmem [resolvable:$true] %s1924_s22 }
 0xea7   : > { %v1643_v58 = vpop.xlane.xlu1 %1642 }
 0xea8   : > { %v1644_v59 = vsub.f32 %v1640_v49, %v1643_v58 }
 0xea9   : > { %v1421_v60 = vpop.xlane.xlu0 %1420 }
 0xeaa   : > { %v1645_v61 = vmul.f32 1.442695, %v1644_v59  ;;  %2290 = vrcp.f32 %v1421_v60  ;;  %v1433_v6 = vand.u32 2147483648, %v1421_v60  ;;  %v1431_v8 = vand.u32 2147483647, %v1421_v60 }
 0xeab   : > { %vm1427_vm4 = vweird.f32 %v1421_v60 }
 0xeac   : > { %2292 = vpow2.f32 %v1645_v61  ;;  %v1434_v11 = vor.u32 1.1754944e-38, %v1433_v6  ;;  %vm1432_vm6 = vcmp.eq.f32.partialorder %v1431_v8, 8.507059e+37  ;;  %v2126_v61 = vld [vmem:[%s3120_s9 + $0x38] sm:$0xff] }
 0xeb0   : > { %v2291_v62 = vpop.eup %2290 }
 0xeb1   : > { %v1423_v63 = vmul.f32 %v2291_v62, %v1421_v60  ;;  %v1546_v0 = vpop.xlane.xlu2 %1545  ;;  %vm1428_vm3 = vweird.f32 %v2291_v62 }
 0xeb2   : > { %v2293_v1 = vpop.eup %2292  ;;  %vm1429_vm5 = vmor %vm1427_vm4, %vm1428_vm3  ;;  %2294 = vrcp.f32 %v1546_v0  ;;  %v1558_v27 = vand.u32 2147483648, %v1546_v0  ;;  %vm1552_vm8 = vweird.f32 %v1546_v0 }
 0xeb3   : > { %v1424_v3 = vsub.f32 1.0, %v1423_v63  ;;  %v1647_v5 = vsel %vm715_vm2, %v2293_v1, 0.0  ;;  %v2123_v63 = vld [vmem:[%s3120_s9 + $0x20] sm:$0xff] }
 0xeb4   : > { %1648 = vadd.xlane.f32.xlu0 %v1647_v5  ;;  %v1559_v33 = vor.u32 1.1754944e-38, %v1558_v27  ;;  %v2256_v27 = vld [vmem:[%s3121_s10 + $0x1] ss:$0 sm:$0xff] }
 0xeb5   : > { %v1425_v7 = vmul.f32 %v2291_v62, %v1424_v3  ;;  %v2134_v3 = vld [vmem:[%s3122_s11 + $0x68] sm:$0xff] }
 0xeb7   : > { %v1426_v10 = vadd.f32 %v2291_v62, %v1425_v7  ;;  %v2133_v7 = vld [vmem:[%s3122_s11 + $0x60] sm:$0xff] }
 0xeb8   : > { %v2295_v19 = vpop.eup %2294 }
 0xeb9   : > { %v1430_v13 = vsel %vm1429_vm5, %v2291_v62, %v1426_v10  ;;  %v1438_v14 = vpop.permute.xlu2 %1437  ;;  %v1548_v20 = vmul.f32 %v2295_v19, %v1546_v0  ;;  %vm1553_vm7 = vweird.f32 %v2295_v19  ;;  %v2124_v62 = vld [vmem:[%s3120_s9 + $0x28] sm:$0xff]  ;;  %v2132_v10 = vld [vmem:[%s3122_s11 + $0x58] sm:$0xff] }
 0xeba   : > { %v1435_v15 = vsel %vm1432_vm6, %v1434_v11, %v1430_v13  ;;  %1458 = vmatpush.msrb.mxu0 %v1438_v14  ;;  %vm1554_vm10 = vmor %vm1552_vm8, %vm1553_vm7  ;;  %vm1905_vm7 = vcmask 253952  }
 0xebb   : > { %v1436_v16 = vmul.f32 %v2287_v53, %v1435_v15  ;;  %v1549_v22 = vsub.f32 1.0, %v1548_v20 }
 0xebd   : > { %2111 = vmatmul.msk.f32.vlgmr.msrb.gmra.mxu0 %vm715_vm2, %v1436_v16  ;;  %v1550_v23 = vmul.f32 %v2295_v19, %v1549_v22 }
 0xebf   : > { %v1666_v17 = vpop.permute.xlu1 %1665  ;;  %v1551_v26 = vadd.f32 %v2295_v19, %v1550_v23 }
 0xec0   : > { %1686 = vmatpush.msrb.mxu3 %v1666_v17 }
 0xec1   : > { %v1555_v32 = vsel %vm1554_vm10, %v2295_v19, %v1551_v26  ;;  %v2129_v26 = vld [vmem:[%s3122_s11 + $0x40] sm:$0xff] }
 0xec8   : > { %1562 = vrot.lane.b32.xlu0 %v2915_v9, %s3176_s23  ;;  %v1556_v9 = vand.u32 2147483647, %v1546_v0  ;;  %v2136_v0 = vld [vmem:[%s3122_s11 + $0x78] sm:$0xff] }
 0xec9   : > { %1815 = vmatpush.msra.mxu1 %v2136_v0 }
 0xeca   : > { %vm1557_vm13 = vcmp.eq.f32.partialorder %v1556_v9, 8.507059e+37 }
 0xecb   : > { %v1560_v36 = vsel %vm1557_vm13, %v1559_v33, %v1555_v32 }
 0xecc   : > { %v1561_v42 = vmul.f32 %v2955_v56, %v1560_v36 }
 0xf27   : > { %v1649_v21 = vpop.xlane.xlu0 %1648 }
 0xf28   : > { %2296 = vrcp.f32 %v1649_v21  ;;  %v1661_v29 = vand.u32 2147483648, %v1649_v21  ;;  %v1659_v31 = vand.u32 2147483647, %v1649_v21  ;;  %vm1655_vm12 = vweird.f32 %v1649_v21 }
 0xf2a   : > { %v1662_v35 = vor.u32 1.1754944e-38, %v1661_v29  ;;  %vm1660_vm15 = vcmp.eq.f32.partialorder %v1659_v31, 8.507059e+37 }
 0xf2e   : > { %v2297_v24 = vpop.eup %2296 }
 0xf2f   : > { %v1651_v25 = vmul.f32 %v2297_v24, %v1649_v21  ;;  %vm1656_vm11 = vweird.f32 %v2297_v24  ;;  %v2255_v21 = vld [vmem:[#allocation7 + $0x1] ss:$0 sm:$0xff] }
 0xf30   : > { %vm1657_vm14 = vmor %vm1655_vm12, %vm1656_vm11 }
 0xf31   : > { %v1652_v28 = vsub.f32 1.0, %v1651_v25  ;;  %v2130_v25 = vld [vmem:[%s3122_s11 + $0x48] sm:$0xff] }
 0xf33   : > { %v1653_v30 = vmul.f32 %v2297_v24, %v1652_v28 }
 0xf35   : > { %v1654_v34 = vadd.f32 %v2297_v24, %v1653_v30  ;;  %v2257_v30 = vld [vmem:[%s3123_s12 + $0x1] ss:$0 sm:$0xff] }
 0xf37   : > { %v1658_v37 = vsel %vm1657_vm14, %v2297_v24, %v1654_v34  ;;  %v2131_v24 = vld [vmem:[%s3122_s11 + $0x50] sm:$0xff] }
 0xf38   : > { %v1663_v38 = vsel %vm1660_vm15, %v1662_v35, %v1658_v37 }
 0xf39   : > { %v1664_v39 = vmul.f32 %v2293_v1, %v1663_v38  ;;  %v2135_v1 = vld [vmem:[%s3122_s11 + $0x70] sm:$0xff] }
 0xf3a   : > { %v1460_v40 = vpop.f32.mrf.mxu0  ;;  %v1563_v41 = vpop.permute.xlu0 %1562  ;;  %1816 = vmatpush.msra.mxu1 %v2135_v1 }
 0xf3b   : > { %2112 = vmatmul.msk.f32.vlgmr.msrb.gmra.mxu2 %vm715_vm2, %v1460_v40  ;;  %1583 = vmatpush.msra.mxu0 %v1563_v41  ;;  %v1880_v41 = vld [vmem:[%s3126_s15 + $0x18] sm:$0xff] }
 0xf3c   : > { %2120 = vmatmul.msk.f32.vlgmr.msrb.gmra.mxu3 %vm715_vm2, %v1664_v39  ;;  %2116 = vmatmul.msk.f32.vlgmr.msra.gmra.mxu0 %vm715_vm2, %v1561_v42  ;;  %v1879_v42 = vld [vmem:[%s3126_s15 + $0x10] sm:$0xff] }
 0xf3d   : > { %1709 = vmatpush.msrb.mxu0 %v2105_v12  ;;  %1781 = vmatpush.msrb.mxu2 %v2126_v61  ;;  %v1878_v12 = vld [vmem:[%s3126_s15 + $0x8] sm:$0xff] }
 0xf3e   : > { %1817 = vmatpush.msra.mxu1 %v2134_v3  ;;  %1897 = vmatpush.msra.mxu3 %v1880_v41 }
 0xf40   : > { %1818 = vmatpush.msra.mxu1 %v2133_v7  ;;  %1898 = vmatpush.msra.mxu3 %v1879_v42 }
 0xf42   : > { %1819 = vmatpush.msra.mxu1 %v2132_v10  ;;  %1899 = vmatpush.msra.mxu3 %v1878_v12 }
 0xf44   : > { %1820 = vmatpush.msra.mxu1 %v2131_v24 }
 0xf46   : > { %1821 = vmatpush.msra.mxu1 %v2130_v25 }
 0xf48   : > { %1822 = vmatpush.msra.mxu1 %v2129_v26 }
 0xfb9   : > { %v1585_v45 = vpop.f32.mrf.mxu0 }
 0xfba   : > { %2117 = vmatmul.msk.f32.vlgmr.msra.gmra.mxu2 %vm715_vm2, %v1585_v45 }
 0xfbe   : > { %v1483_v47 = vpop.f32.mrf.mxu2 }
 0xfbf   : > { %v1688_v46 = vpop.f32.mrf.mxu3  ;;  %v1507_v48 = vadd.f32 %v2951_v44, %v1483_v47 }
 0xfc0   : > { %2121 = vmatmul.msk.f32.vlgmr.msrb.gmra.mxu0 %vm715_vm2, %v1688_v46  ;;  %v1877_v46 = vld [vmem:[%s3126_s15] sm:$0xff] }
 0xfc1   : > { %1900 = vmatpush.msra.mxu3 %v1877_v46 }
0x103d   : > { %v1608_v49 = vpop.f32.mrf.mxu2  ;;  %v1711_v52 = vpop.f32.mrf.mxu0 }
0x103e   : > { %v1611_v50 = vadd.f32 %v1608_v49, %v1507_v48 }
0x1040   : > { %v1714_v53 = vadd.f32 %v1711_v52, %v1611_v50  ;;  %v2550_v50 = vmov 8.0  }
0x1042   : > { %v1720_v54 = vadd.f32 %v2253_v51, %v1714_v53 }
0x1044   : > { %v1721_v55 = vadd.f32 %v1720_v54, %v2908_v4  ;;  %v2125_v4 = vld [vmem:[%s3120_s9 + $0x30] sm:$0xff]  ;;  %v2258_v54 = vld [vmem:[%s3124_s13 + $0x1] ss:$0 sm:$0xff] }
0x1045   : > { %1782 = vmatpush.msrb.mxu2 %v2125_v4 }
0x1046   : > { %v1726_v56 = vsel %vm684_vm1, %v1721_v55, 0.0 }
0x1047   : > { %1727 = vadd.xlane.f32.xlu2 %v1726_v56  ;;  %1783 = vmatpush.msrb.mxu2 %v2124_v62  ;;  %v2259_v56 = vld [vmem:[#allocation8 + $0x1] ss:$0 sm:$0xff] }
0x1049   : > { %1784 = vmatpush.msrb.mxu2 %v2123_v63 }
0x10ba   : > { %v1728_v57 = vpop.xlane.xlu2 %1727 }
0x10bb   : > { %v1729_v58 = vmul.f32 %v1728_v57, %v2840_v2 }
0x10bd   : > { %v1730_v59 = vsub.f32 %v1721_v55, %v1729_v58 }
0x10bf   : > { %v1731_v60 = vmul.f32 %v1730_v59, %v1730_v59 }
0x10c1   : > { %v1732_v44 = vsel %vm684_vm1, %v1731_v60, 0.0 }
0x10c2   : > { %1733 = vadd.xlane.f32.xlu0 %v1732_v44 }
0x1135   : > { %v1734_v5 = vpop.xlane.xlu0 %1733 }
0x1136   : > { %v1735_v6 = vmul.f32 %v1734_v5, %v2840_v2 }
0x1138   : > { %v1736_v8 = vadd.f32 1e-05, %v1735_v6 }
0x113a   : > { %2298 = vrsqrt.f32 %v1736_v8  ;;  %vm1743_vm0 = vweird.f32 %v1736_v8 }
0x1140   : > { %v2299_v11 = vpop.eup %2298 }
0x1141   : > { %v1738_v13 = vmul.f32 %v2299_v11, %v1736_v8  ;;  %vm1744_vm2 = vweird.f32 %v2299_v11 }
0x1142   : > { %vm1745_vm3 = vmor %vm1743_vm0, %vm1744_vm2 }
0x1143   : > { %v1739_v14 = vmul.f32 %v2299_v11, %v1738_v13 }
0x1145   : > { %v1740_v15 = vmul.f32 0.5, %v1739_v14 }
0x1147   : > { %v1741_v16 = vsub.f32 1.5, %v1740_v15 }
0x1149   : > { %v1742_v17 = vmul.f32 %v2299_v11, %v1741_v16 }
0x114b   : > { %v1746_v19 = vsel %vm1745_vm3, %v2299_v11, %v1742_v17 }
0x114c   : > { %v1747_v20 = vmul.f32 %v1746_v19, %v1730_v59 }
0x114e   : > { %v1751_v22 = vmul.f32 %v2254_v18, %v1747_v20 }
0x1150   : > { %v1755_v23 = vadd.f32 %v2255_v21, %v1751_v22 }
0x1152   : > { %2128 = vmatmul.msk.f32.vlgmr.msrb.gmra.mxu2 %vm684_vm1, %v1755_v23 }
0x11d5   : > { %v1786_v28 = vpop.f32.mrf.mxu2 }
0x11d6   : > { %v1787_v9 = vadd.f32 %v2256_v27, %v1786_v28 }
0x11d8   : > { %v1789_v29 = vmax.f32 %v1787_v9, 0.0 }
0x11da   : > { %2138 = vmatmul.msk.f32.vlgmr.msra.gmra.mxu1 %vm1211_vm9, %v1789_v29 }
0x1257   : > { %v1824_v31 = vpop.f32.mrf.mxu1 }
0x1258   : > { %v1825_v32 = vadd.f32 %v2257_v30, %v1824_v31 }
0x125a   : > { %v1827_v33 = vadd.f32 %v1825_v32, %v1755_v23 }
0x125c   : > { %v1832_v34 = vsel %vm684_vm1, %v1827_v33, 0.0 }
0x125d   : > { %1833 = vadd.xlane.f32.xlu1 %v1832_v34 }
0x12d0   : > { %v1834_v35 = vpop.xlane.xlu1 %1833 }
0x12d1   : > { %v1835_v36 = vmul.f32 %v1834_v35, %v2840_v2 }
0x12d3   : > { %v1836_v37 = vsub.f32 %v1827_v33, %v1835_v36 }
0x12d5   : > { %v1837_v38 = vmul.f32 %v1836_v37, %v1836_v37 }
0x12d7   : > { %v1838_v39 = vsel %vm684_vm1, %v1837_v38, 0.0 }
0x12d8   : > { %1839 = vadd.xlane.f32.xlu2 %v1838_v39 }
0x134b   : > { %v1840_v40 = vpop.xlane.xlu2 %1839 }
0x134c   : > { %v1841_v43 = vmul.f32 %v1840_v40, %v2840_v2 }
0x134e   : > { %v1842_v45 = vadd.f32 1e-05, %v1841_v43 }
0x1350   : > { %2300 = vrsqrt.f32 %v1842_v45  ;;  %vm1849_vm4 = vweird.f32 %v1842_v45 }
0x1351   : > { %2302 = vrcp.f32 %v2550_v50 }
0x1356   : > { %v2301_v47 = vpop.eup %2300 }
0x1357   : > { %v1844_v48 = vmul.f32 %v2301_v47, %v1842_v45  ;;  %vm1850_vm9 = vweird.f32 %v2301_v47  ;;  %v2303_v52 = vpop.eup %2302 }
0x1358   : > { %vm1851_vm5 = vmor %vm1849_vm4, %vm1850_vm9  ;;  %v1870_v58 = vmul.f32 8.0, %v2303_v52  ;;  %vm1874_vm6 = vweird.f32 %v2303_v52 }
0x1359   : > { %v1845_v49 = vmul.f32 %v2301_v47, %v1844_v48 }
0x135a   : > { %v1871_v44 = vsub.f32 1.0, %v1870_v58 }
0x135b   : > { %v1846_v2 = vmul.f32 0.5, %v1845_v49 }
0x135c   : > { %v1872_v62 = vmul.f32 %v2303_v52, %v1871_v44 }
0x135d   : > { %v1847_v51 = vsub.f32 1.5, %v1846_v2 }
0x135e   : > { %v1873_v1 = vadd.f32 %v2303_v52, %v1872_v62 }
0x135f   : > { %v1848_v53 = vmul.f32 %v2301_v47, %v1847_v51 }
0x1360   : > { %v1875_v6 = vsel %vm1874_vm6, %v2303_v52, %v1873_v1 }
0x1361   : > { %v1852_v55 = vsel %vm1851_vm5, %v2301_v47, %v1848_v53 }
0x1362   : > { %v1853_v57 = vmul.f32 %v1852_v55, %v1836_v37 }
0x1364   : > { %v1857_v59 = vmul.f32 %v2258_v54, %v1853_v57 }
0x1366   : > { %v1861_v60 = vadd.f32 %v2259_v56, %v1857_v59 }
0x1368   : > { %v1862_v61 = vsel %vm684_vm1, %v1861_v60, 0.0 }
0x1369   : > { %v1863_v4 = vrot.slane %v1862_v61, 4 }
0x136b   : > { %v1864_v63 = vadd.f32 %v1863_v4, %v1862_v61 }
0x136d   : > { %v1865_v0 = vrot.slane %v1864_v63, 2 }
0x136f   : > { %v1866_v3 = vadd.f32 %v1865_v0, %v1864_v63 }
0x1371   : > { %v1867_v5 = vrot.slane %v1866_v3, 1 }
0x1373   : > { %v1868_v7 = vadd.f32 %v1867_v5, %v1866_v3 }
0x1375   : > { %v1876_v8 = vmul.f32 %v1875_v6, %v1868_v7 }
0x1377   : > { %2140 = vmatmul.msk.f32.vlgmr.msra.gmra.mxu3 %vm684_vm1, %v1876_v8  ;;  %1906 = vst.msk [vmem:[%s634_s19] sm:$0x1] %vm1905_vm7, %v1876_v8 }
0x1378   : > { %2451 = shalt.err (!%p2448_p8)
}
0x1379   : > { %2159 = dma.vmem_to_hbm [thread:$0]  (%p2684_p5), %s1925_s22, 16, %s1927_s1, %s1910_s17   ;;  %vm1907_vm1 = vcmask 8192  }
0x137a   : > { %s3179_s7 = sld [smem:[#allocation33_spill]]  ;;  %s640_s3 = scalar_lea.vmem [#allocation11], %s3056_s25 }
0x137b   : > { %s3180_s4 = sld [smem:[#allocation31_spill]]  ;;  %s1937_s18 = sshll.u32 %s640_s3, 4  ;;  %s1938_s18 = int_to_ptr.vmem [resolvable:$true] %s1937_s18 }
0x137c   : > { %s1914_s29 = scalar_lea.sflag [#allocation12], %s3056_s25 }
0x1380   : > { %s1935_s16 = scalar_lea.hbm %s3179_s7, %s2667_s0 }
0x1381   : > { %v1881_v10 = vld [vmem:[%s3180_s4] sm:$0x1]  ;;  %s1939_s30 = sshll.u32 %s1935_s16, 4  ;;  %s2472_s4 = scalar_lea.hbm %s3179_s7, 2  ;;  %s1940_s30 = int_to_ptr.hbm [resolvable:$true] %s1939_s30 }
0x1382   : > { %s2466_s22 = sshra.s32 %s1940_s30, 4  ;;  %s2467_s22 = int_to_ptr.hbm [resolvable:$true] %s2466_s22 }
0x1383   : > { %s2468_s1 = scalar_lea.hbm %s2467_s22, 1  ;;  %p2473_p12 = scmp.lt.s32.totalorder %s2467_s22, %s3179_s7 }
0x1384   : > { %p2469_p9 = scmp.ne.s32.totalorder %s2467_s22, %s2468_s1  ;;  %p2474_p13 = scmp.lt.s32.totalorder %s2472_s4, %s2468_s1 }
0x1386   : > { %p2470_p10 = pnand %p2469_p9, %p2684_p5  ;;  %p2475_p0 = por %p2474_p13, %p2473_p12 }
0x1388   : > { %p2471_p11 = pneg %p2470_p10 }
0x138a   : > { %p2476_p1 = pnand %p2475_p0, %p2471_p11 }
0x13fa   : > { %v1902_v11 = vpop.f32.mrf.mxu3 }
0x13fb   : > { %v1903_v13 = vadd.f32 %v1902_v11, %v1881_v10 }
0x13fd   : > { %1908 = vst.msk [vmem:[%s640_s3] sm:$0x1] %vm1907_vm1, %v1903_v13 }
0x13fe   : > { %2479 = shalt.err (!%p2476_p1)
}
0x13ff   : > { %2160 = dma.vmem_to_hbm [thread:$0]  (%p2684_p5), %s1938_s18, 16, %s1940_s30, %s1914_s29  }
0x1400 PF: > { %s3181_s25 = sld [smem:[#allocation20_spill]] }
0x1401   : > { %s3182_s21 = sld [smem:[#allocation18_spill]] }
0x1406   : > { %p2191_p2 = scmp.ge.s32.totalorder %s3181_s25, 2 }
0x1407   : > { %s1951_s26 = sand.u32 1, %s3182_s21  }
0x1408   : > { %p2177_p3 = pnand %p2191_p2, %p2688_p6  ;;  %s1952_s20 = scalar_lea.sflag [#allocation4], %s1951_s26 }
0x140a   : > { %p2178_p4 = pneg %p2177_p3 }
0x140c   : > { %2509 = dma.done.wait (%p2178_p4), %s1952_s20, 16  }
0x140d   : > { %2511 = vsyncadd (%p2178_p4), %s1952_s20, 4294967280  ;;  %s1961_s3 = scalar_lea.sflag [#allocation12], %s1951_s26 }
0x140e   : > { %2513 = dma.done.wait (%p2178_p4), %s1961_s3, 16  }
0x140f   : > { %2515 = vsyncadd (%p2178_p4), %s1961_s3, 4294967280  ;;  %s3184_s30 = sld [smem:[#allocation21_spill]]  ;;  %s3187_s27 = smov %s2522_s28 }
0x1410   : > { %s3185_s22 = sld [smem:[#allocation19_spill]] }
0x1411   : > { %s3186_s29 = sld [smem:[#allocation22_spill]] }
0x1415   : > { %p35_p5 = scmp.ge.s32.totalorder %s3184_s30, 4  }
0x1416   : > { %s3188_s28 = smov %s3185_s22 }
0x1417   :  { %37 = sbr.rel (!%p35_p5) target bundleno = 18 (0x12), region = 169 }
0x141c   :  { %1966 = vsyncpa [#allocation3], 1 }
0x141d   :  { %1968 = vsyncpa [#allocation3 + $0x1], 1 }
0x141e   :  { %1969 = vsyncpa [#allocation6], 1 }
0x141f   :  { %1970 = vsyncpa [#allocation9], 1 }
0x1420   :  { %1971 = vsyncpa [#allocation4], 1 }
0x1421   :  { %1973 = vsyncpa [#allocation4 + $0x1], 1 }
0x1422   :  { %1974 = vsyncpa [#allocation12], 1 }
0x1423   :  { %1976 = vsyncpa [#allocation12 + $0x1], 1 }

</bundles_post_ra>
